<compile_context>
chip_gen: v5e
topology: v5e:2x2
jax: 0.10.0
libtpu: 0.0.40
codegen_flags: <defaults>
</compile_context>

<pallas_src>
import math
import functools

import jax
import jax.numpy as jnp
from jax import lax
from jax.experimental import pallas as pl
from jax.experimental.pallas import tpu as pltpu

# ---- model config (small, consistent with the module's __init__) ----
NTOKEN = 50     # vocab size
NINP = 32       # embed dim (d_model)
NHEAD = 2       # attention heads
NHID = 64       # feedforward hidden dim
NLAYERS = 2     # encoder layers
SEQ = 8         # sequence length
BATCH = 2       # batch size

VPAD = 128      # lane-dense padded vocab width for the decoder output
NEG_INF = -1e30  # finite "minus infinity" (NaN-safe on device)

# kernel-layout per-layer parameter order (all pre-transposed in the wrapper)
LAYER_PARAM_NAMES = (
    'wq', 'wk', 'wv',          # (H, D, hd) — x @ wq[h] gives head-h queries
    'bq', 'bk', 'bv',          # (H, 1, hd)
    'wo',                      # (H, hd, D) — ctx_h @ wo[h] accumulated over heads
    'b_o',                     # (1, D)
    'ln1_g', 'ln1_b',          # (1, D)
    'w1_t', 'b1',              # (D, NHID), (1, NHID)
    'w2_t', 'b2',              # (NHID, D), (1, D)
    'ln2_g', 'ln2_b',          # (1, D)
)


# ----------------------------- Pallas kernel -----------------------------

def _layernorm(x, g, b, eps=1e-5):
    mu = jnp.mean(x, axis=-1, keepdims=True)
    var = jnp.mean((x - mu) ** 2, axis=-1, keepdims=True)
    return (x - mu) * lax.rsqrt(var + eps) * g + b


def fused_transformer_kernel(*refs, nlayers, nhead, batch, seq, d_model, ntoken):
    n_lp = len(LAYER_PARAM_NAMES)
    ids_ref, pe_ref, emb_ref = refs[0], refs[1], refs[2]
    layer_refs = refs[3:3 + nlayers * n_lp]
    dec_w_ref, dec_b_ref, out_ref = refs[3 + nlayers * n_lp:]

    B, S, D = batch, seq, d_model
    hd = D // nhead
    scale = 1.0 / math.sqrt(hd)

    # --- embedding gather (one-hot matmul), * sqrt(D), + positional encoding ---
    ids = ids_ref[...]                                           # (B*S, 1) int32
    vocab_iota = lax.broadcasted_iota(jnp.int32, (B * S, ntoken), 1)
    onehot = (ids == vocab_iota).astype(jnp.float32)             # (B*S, V)
    x = jnp.dot(onehot, emb_ref[...], preferred_element_type=jnp.float32)
    x = x * math.sqrt(D) + pe_ref[...]                           # (B*S, D)

    # causal mask (allow key <= query), generated once in-kernel
    qi = lax.broadcasted_iota(jnp.int32, (S, S), 0)
    ki = lax.broadcasted_iota(jnp.int32, (S, S), 1)
    causal = (ki <= qi)[None, :, :]                              # (1, S, S)

    for l in range(nlayers):
        lp = dict(zip(LAYER_PARAM_NAMES, layer_refs[l * n_lp:(l + 1) * n_lp]))

        # --- multi-head self-attention (post-norm); batched over B per head ---
        attn = jnp.zeros((B * S, D), jnp.float32)
        for h in range(nhead):
            qh = (jnp.dot(x, lp['wq'][h], preferred_element_type=jnp.float32)
                  + lp['bq'][h]).reshape(B, S, hd)
            kh = (jnp.dot(x, lp['wk'][h], preferred_element_type=jnp.float32)
                  + lp['bk'][h]).reshape(B, S, hd)
            vh = (jnp.dot(x, lp['wv'][h], preferred_element_type=jnp.float32)
                  + lp['bv'][h]).reshape(B, S, hd)

            s = jnp.einsum('bqd,bkd->bqk', qh, kh,
                           preferred_element_type=jnp.float32) * scale
            s = jnp.where(causal, s, NEG_INF)
            m = jnp.max(s, axis=-1, keepdims=True)
            e = jnp.exp(s - m)
            denom = jnp.sum(e, axis=-1, keepdims=True)
            prob = e * pl.reciprocal(denom, approx=True)

            ctx = jnp.einsum('bqk,bkd->bqd', prob, vh,
                             preferred_element_type=jnp.float32).reshape(B * S, hd)
            # recombine heads through per-head slice of the output projection
            attn = attn + jnp.dot(ctx, lp['wo'][h],
                                  preferred_element_type=jnp.float32)
        attn = attn + lp['b_o'][...]
        x1 = _layernorm(x + attn, lp['ln1_g'][...], lp['ln1_b'][...])

        # --- feedforward ---
        h1 = jnp.dot(x1, lp['w1_t'][...], preferred_element_type=jnp.float32) + lp['b1'][...]
        h1 = jnp.maximum(h1, 0.0)                                # ReLU
        ff = jnp.dot(h1, lp['w2_t'][...], preferred_element_type=jnp.float32) + lp['b2'][...]
        x = _layernorm(x1 + ff, lp['ln2_g'][...], lp['ln2_b'][...])

    # --- decoder Linear + log_softmax over lane-dense padded vocab ---
    logits = jnp.dot(x, dec_w_ref[...], preferred_element_type=jnp.float32) + dec_b_ref[...]
    m = jnp.max(logits, axis=-1, keepdims=True)
    z = logits - m
    lse = jnp.log(jnp.sum(jnp.exp(z), axis=-1, keepdims=True))
    out_ref[...] = z - lse                                       # (B*S, VPAD)


# ----------------------------- wrappers -----------------------------

def positional_encoding(S, D):
    position = jnp.arange(S, dtype=jnp.float32)[:, None]
    div_term = jnp.exp(jnp.arange(0, D, 2, dtype=jnp.float32) * (-math.log(10000.0) / D))
    ang = position * div_term
    pe = jnp.zeros((S, D), jnp.float32)
    pe = pe.at[:, 0::2].set(jnp.sin(ang))
    pe = pe.at[:, 1::2].set(jnp.cos(ang))
    return pe                                                    # (S, D)


def transformer_forward(src, params):
    """src: (S, B) int32 token ids -> (S, B, NTOKEN) log-probabilities."""
    S, B = src.shape
    D = NINP

    # tiny wrapper-side layout plumbing (batch-major rows, r = b*S + s)
    ids = src.T.reshape(B * S, 1).astype(jnp.int32)
    pe = positional_encoding(S, D)
    pe_flat = jnp.broadcast_to(pe[None], (B, S, D)).reshape(B * S, D)

    inputs = [ids, pe_flat, params['embedding']]
    for layer in params['layers']:
        inputs.extend(layer[name] for name in LAYER_PARAM_NAMES)
    inputs.extend([params['dec_w_t'], params['dec_b_pad']])

    kernel = functools.partial(
        fused_transformer_kernel,
        nlayers=NLAYERS, nhead=NHEAD, batch=B, seq=S, d_model=D, ntoken=NTOKEN)

    out = pl.pallas_call(
        kernel,
        out_shape=jax.ShapeDtypeStruct((B * S, VPAD), jnp.float32),
        compiler_params=pltpu.CompilerParams(vmem_limit_bytes=32 * 1024 * 1024),
    )(*inputs)

    # (B*S, VPAD) -> (S, B, NTOKEN)
    return out.reshape(B, S, VPAD).transpose(1, 0, 2)[..., :NTOKEN]


# --------------- init (PyTorch layout) + kernel-layout packing ---------------

def _pack_layer(raw, d, nhead):
    """Pre-transpose / pre-slice a PyTorch-layout encoder layer for the kernel."""
    hd = d // nhead
    wq, wk, wv = raw['w_qkv'][:d], raw['w_qkv'][d:2 * d], raw['w_qkv'][2 * d:]
    bq, bk, bv = raw['b_qkv'][0, :d], raw['b_qkv'][0, d:2 * d], raw['b_qkv'][0, 2 * d:]
    return dict(
        wq=wq.reshape(nhead, hd, d).transpose(0, 2, 1),   # (H, D, hd)
        wk=wk.reshape(nhead, hd, d).transpose(0, 2, 1),
        wv=wv.reshape(nhead, hd, d).transpose(0, 2, 1),
        bq=bq.reshape(nhead, 1, hd),
        bk=bk.reshape(nhead, 1, hd),
        bv=bv.reshape(nhead, 1, hd),
        wo=raw['w_o'].T.reshape(nhead, hd, d),            # (H, hd, D)
        b_o=raw['b_o'],
        ln1_g=raw['ln1_g'], ln1_b=raw['ln1_b'],
        w1_t=raw['w1'].T, b1=raw['b1'],
        w2_t=raw['w2'].T, b2=raw['b2'],
        ln2_g=raw['ln2_g'], ln2_b=raw['ln2_b'],
    )


def init_params(key):
    keys = jax.random.split(key, 2 + NLAYERS)
    initrange = 0.1
    d = NINP

    embedding = jax.random.uniform(keys[0], (NTOKEN, d), jnp.float32, -initrange, initrange)
    dec_w = jax.random.uniform(keys[1], (NTOKEN, d), jnp.float32, -initrange, initrange)
    dec_b = jnp.zeros((1, NTOKEN), jnp.float32)

    # lane-dense padded decoder weights (padded logits forced to NEG_INF via bias)
    dec_w_t = jnp.zeros((d, VPAD), jnp.float32).at[:, :NTOKEN].set(dec_w.T)
    dec_b_pad = jnp.full((1, VPAD), NEG_INF, jnp.float32).at[:, :NTOKEN].set(dec_b)

    layers = []
    for l in range(NLAYERS):
        lk = jax.random.split(keys[2 + l], 4)
        raw = dict(
            w_qkv=jax.random.uniform(lk[0], (3 * d, d), jnp.float32, -initrange, initrange),
            b_qkv=jnp.zeros((1, 3 * d), jnp.float32),
            w_o=jax.random.uniform(lk[1], (d, d), jnp.float32, -initrange, initrange),
            b_o=jnp.zeros((1, d), jnp.float32),
            ln1_g=jnp.ones((1, d), jnp.float32),
            ln1_b=jnp.zeros((1, d), jnp.float32),
            w1=jax.random.uniform(lk[2], (NHID, d), jnp.float32, -initrange, initrange),
            b1=jnp.zeros((1, NHID), jnp.float32),
            w2=jax.random.uniform(lk[3], (d, NHID), jnp.float32, -initrange, initrange),
            b2=jnp.zeros((1, d), jnp.float32),
            ln2_g=jnp.ones((1, d), jnp.float32),
            ln2_b=jnp.zeros((1, d), jnp.float32),
        )
        layers.append(_pack_layer(raw, d, NHEAD))

    return dict(embedding=embedding, dec_w_t=dec_w_t, dec_b_pad=dec_b_pad, layers=layers)


if __name__ == "__main__":
    key = jax.random.PRNGKey(0)
    pkey, skey = jax.random.split(key)
    params = init_params(pkey)
    src = jax.random.randint(skey, (SEQ, BATCH), 0, NTOKEN, dtype=jnp.int32)

    out = jax.jit(transformer_forward)(src, params)
    out = jax.block_until_ready(out)

    assert out.shape == (SEQ, BATCH, NTOKEN)
    assert bool(jnp.all(jnp.isfinite(out)))
    # rows of log_softmax must sum (in prob space) to ~1
    assert bool(jnp.allclose(jnp.sum(jnp.exp(out), axis=-1), 1.0, atol=1e-3))
    print("KERNEL_OK")
</pallas_src>

<mosaic_0001>
module attributes {stable_mosaic.version = 11 : i64} {
  func.func @fused_transformer_kernel(%arg0: memref<16x1xi32, #tpu.memory_space<vmem>>, %arg1: memref<16x32xf32, #tpu.memory_space<vmem>>, %arg2: memref<50x32xf32, #tpu.memory_space<vmem>>, %arg3: memref<2x32x16xf32, #tpu.memory_space<vmem>>, %arg4: memref<2x32x16xf32, #tpu.memory_space<vmem>>, %arg5: memref<2x32x16xf32, #tpu.memory_space<vmem>>, %arg6: memref<2x1x16xf32, #tpu.memory_space<vmem>>, %arg7: memref<2x1x16xf32, #tpu.memory_space<vmem>>, %arg8: memref<2x1x16xf32, #tpu.memory_space<vmem>>, %arg9: memref<2x16x32xf32, #tpu.memory_space<vmem>>, %arg10: memref<1x32xf32, #tpu.memory_space<vmem>>, %arg11: memref<1x32xf32, #tpu.memory_space<vmem>>, %arg12: memref<1x32xf32, #tpu.memory_space<vmem>>, %arg13: memref<32x64xf32, #tpu.memory_space<vmem>>, %arg14: memref<1x64xf32, #tpu.memory_space<vmem>>, %arg15: memref<64x32xf32, #tpu.memory_space<vmem>>, %arg16: memref<1x32xf32, #tpu.memory_space<vmem>>, %arg17: memref<1x32xf32, #tpu.memory_space<vmem>>, %arg18: memref<1x32xf32, #tpu.memory_space<vmem>>, %arg19: memref<2x32x16xf32, #tpu.memory_space<vmem>>, %arg20: memref<2x32x16xf32, #tpu.memory_space<vmem>>, %arg21: memref<2x32x16xf32, #tpu.memory_space<vmem>>, %arg22: memref<2x1x16xf32, #tpu.memory_space<vmem>>, %arg23: memref<2x1x16xf32, #tpu.memory_space<vmem>>, %arg24: memref<2x1x16xf32, #tpu.memory_space<vmem>>, %arg25: memref<2x16x32xf32, #tpu.memory_space<vmem>>, %arg26: memref<1x32xf32, #tpu.memory_space<vmem>>, %arg27: memref<1x32xf32, #tpu.memory_space<vmem>>, %arg28: memref<1x32xf32, #tpu.memory_space<vmem>>, %arg29: memref<32x64xf32, #tpu.memory_space<vmem>>, %arg30: memref<1x64xf32, #tpu.memory_space<vmem>>, %arg31: memref<64x32xf32, #tpu.memory_space<vmem>>, %arg32: memref<1x32xf32, #tpu.memory_space<vmem>>, %arg33: memref<1x32xf32, #tpu.memory_space<vmem>>, %arg34: memref<1x32xf32, #tpu.memory_space<vmem>>, %arg35: memref<32x128xf32, #tpu.memory_space<vmem>>, %arg36: memref<1x128xf32, #tpu.memory_space<vmem>>, %arg37: memref<16x128xf32, #tpu.memory_space<vmem>>) attributes {dimension_semantics = [], scalar_prefetch = 0 : i64, scratch_operands = 0 : i64, tpu.core_type = #tpu.core_type<tc>} {
    %c0 = arith.constant 0 : index
    %c0_0 = arith.constant 0 : index
    %0 = vector.load %arg0[%c0, %c0_0] : memref<16x1xi32, #tpu.memory_space<vmem>>, vector<16x1xi32>
    %1 = tpu.iota {dimensions = array<i32: 1>} : vector<16x50xi32>
    %2 = vector.broadcast %0 : vector<16x1xi32> to vector<16x50xi32>
    %3 = arith.cmpi eq, %2, %1 : vector<16x50xi32>
    %4 = arith.extui %3 : vector<16x50xi1> to vector<16x50xi32>
    %5 = arith.sitofp %4 : vector<16x50xi32> to vector<16x50xf32>
    %c0_1 = arith.constant 0 : index
    %c0_2 = arith.constant 0 : index
    %6 = vector.load %arg2[%c0_1, %c0_2] : memref<50x32xf32, #tpu.memory_space<vmem>>, vector<50x32xf32>
    %cst = arith.constant dense<0.000000e+00> : vector<16x32xf32>
    %7 = tpu.matmul %5, %6, %cst {dimension_numbers = #tpu.dot_dimension_numbers<[1], [0], [0], [1], [0, 0, 1, 1], [], []>} : vector<16x50xf32>, vector<50x32xf32>, vector<16x32xf32> -> vector<16x32xf32>
    %cst_3 = arith.constant 5.65685415 : f32
    %8 = vector.broadcast %cst_3 : f32 to vector<16x32xf32>
    %9 = arith.mulf %7, %8 : vector<16x32xf32>
    %c0_4 = arith.constant 0 : index
    %c0_5 = arith.constant 0 : index
    %10 = vector.load %arg1[%c0_4, %c0_5] : memref<16x32xf32, #tpu.memory_space<vmem>>, vector<16x32xf32>
    %11 = arith.addf %9, %10 : vector<16x32xf32>
    %12 = tpu.iota {dimensions = array<i32: 0>} : vector<8x8xi32>
    %13 = tpu.iota {dimensions = array<i32: 1>} : vector<8x8xi32>
    %14 = arith.cmpi sle, %13, %12 : vector<8x8xi32>
    %15 = vector.shape_cast %14 : vector<8x8xi1> to vector<1x8x8xi1>
    %cst_6 = arith.constant 0.000000e+00 : f32
    %16 = vector.broadcast %cst_6 : f32 to vector<16x32xf32>
    %c0_7 = arith.constant 0 : index
    %c0_8 = arith.constant 0 : index
    %c0_9 = arith.constant 0 : index
    %17 = vector.load %arg3[%c0_7, %c0_8, %c0_9] : memref<2x32x16xf32, #tpu.memory_space<vmem>>, vector<1x32x16xf32>
    %18 = vector.shape_cast %17 : vector<1x32x16xf32> to vector<32x16xf32>
    %cst_10 = arith.constant dense<0.000000e+00> : vector<16x16xf32>
    %19 = tpu.matmul %11, %18, %cst_10 {dimension_numbers = #tpu.dot_dimension_numbers<[1], [0], [0], [1], [0, 0, 1, 1], [], []>} : vector<16x32xf32>, vector<32x16xf32>, vector<16x16xf32> -> vector<16x16xf32>
    %c0_11 = arith.constant 0 : index
    %c0_12 = arith.constant 0 : index
    %c0_13 = arith.constant 0 : index
    %20 = vector.load %arg6[%c0_11, %c0_12, %c0_13] : memref<2x1x16xf32, #tpu.memory_space<vmem>>, vector<1x1x16xf32>
    %21 = vector.shape_cast %20 : vector<1x1x16xf32> to vector<1x16xf32>
    %22 = vector.broadcast %21 : vector<1x16xf32> to vector<16x16xf32>
    %23 = arith.addf %19, %22 : vector<16x16xf32>
    %24 = vector.shape_cast %23 : vector<16x16xf32> to vector<2x8x16xf32>
    %c0_14 = arith.constant 0 : index
    %c0_15 = arith.constant 0 : index
    %c0_16 = arith.constant 0 : index
    %25 = vector.load %arg4[%c0_14, %c0_15, %c0_16] : memref<2x32x16xf32, #tpu.memory_space<vmem>>, vector<1x32x16xf32>
    %26 = vector.shape_cast %25 : vector<1x32x16xf32> to vector<32x16xf32>
    %cst_17 = arith.constant dense<0.000000e+00> : vector<16x16xf32>
    %27 = tpu.matmul %11, %26, %cst_17 {dimension_numbers = #tpu.dot_dimension_numbers<[1], [0], [0], [1], [0, 0, 1, 1], [], []>} : vector<16x32xf32>, vector<32x16xf32>, vector<16x16xf32> -> vector<16x16xf32>
    %c0_18 = arith.constant 0 : index
    %c0_19 = arith.constant 0 : index
    %c0_20 = arith.constant 0 : index
    %28 = vector.load %arg7[%c0_18, %c0_19, %c0_20] : memref<2x1x16xf32, #tpu.memory_space<vmem>>, vector<1x1x16xf32>
    %29 = vector.shape_cast %28 : vector<1x1x16xf32> to vector<1x16xf32>
    %30 = vector.broadcast %29 : vector<1x16xf32> to vector<16x16xf32>
    %31 = arith.addf %27, %30 : vector<16x16xf32>
    %32 = vector.shape_cast %31 : vector<16x16xf32> to vector<2x8x16xf32>
    %c0_21 = arith.constant 0 : index
    %c0_22 = arith.constant 0 : index
    %c0_23 = arith.constant 0 : index
    %33 = vector.load %arg5[%c0_21, %c0_22, %c0_23] : memref<2x32x16xf32, #tpu.memory_space<vmem>>, vector<1x32x16xf32>
    %34 = vector.shape_cast %33 : vector<1x32x16xf32> to vector<32x16xf32>
    %cst_24 = arith.constant dense<0.000000e+00> : vector<16x16xf32>
    %35 = tpu.matmul %11, %34, %cst_24 {dimension_numbers = #tpu.dot_dimension_numbers<[1], [0], [0], [1], [0, 0, 1, 1], [], []>} : vector<16x32xf32>, vector<32x16xf32>, vector<16x16xf32> -> vector<16x16xf32>
    %c0_25 = arith.constant 0 : index
    %c0_26 = arith.constant 0 : index
    %c0_27 = arith.constant 0 : index
    %36 = vector.load %arg8[%c0_25, %c0_26, %c0_27] : memref<2x1x16xf32, #tpu.memory_space<vmem>>, vector<1x1x16xf32>
    %37 = vector.shape_cast %36 : vector<1x1x16xf32> to vector<1x16xf32>
    %38 = vector.broadcast %37 : vector<1x16xf32> to vector<16x16xf32>
    %39 = arith.addf %35, %38 : vector<16x16xf32>
    %40 = vector.shape_cast %39 : vector<16x16xf32> to vector<2x8x16xf32>
    "tpu.trace_start"() <{level = 10 : i32, message = "bqd,bkd->bqk"}> : () -> ()
    %cst_28 = arith.constant dense<0.000000e+00> : vector<2x8x8xf32>
    %41 = tpu.matmul %24, %32, %cst_28 {dimension_numbers = #tpu.dot_dimension_numbers<[2], [2], [1], [1], [0, 0, 0, 1, 1, 1], [0], [0]>} : vector<2x8x16xf32>, vector<2x8x16xf32>, vector<2x8x8xf32> -> vector<2x8x8xf32>
    "tpu.trace_stop"() : () -> ()
    %cst_29 = arith.constant 2.500000e-01 : f32
    %42 = vector.broadcast %cst_29 : f32 to vector<2x8x8xf32>
    %43 = arith.mulf %41, %42 : vector<2x8x8xf32>
    %cst_30 = arith.constant -1.000000e+30 : f32
    %44 = vector.shape_cast %15 : vector<1x8x8xi1> to vector<1x8x8xi1>
    %45 = vector.broadcast %44 : vector<1x8x8xi1> to vector<2x8x8xi1>
    %46 = vector.broadcast %cst_30 : f32 to vector<2x8x8xf32>
    %47 = arith.select %45, %43, %46 : vector<2x8x8xi1>, vector<2x8x8xf32>
    %cst_31 = arith.constant dense<0xFF800000> : vector<2x8xf32>
    %48 = vector.multi_reduction <maximumf>, %47, %cst_31 [2] : vector<2x8x8xf32> to vector<2x8xf32>
    %49 = vector.shape_cast %48 : vector<2x8xf32> to vector<2x8x1xf32>
    %50 = vector.broadcast %49 : vector<2x8x1xf32> to vector<2x8x8xf32>
    %51 = arith.subf %47, %50 : vector<2x8x8xf32>
    %52 = math.exp %51 : vector<2x8x8xf32>
    %cst_32 = arith.constant dense<0.000000e+00> : vector<2x8xf32>
    %53 = vector.multi_reduction <add>, %52, %cst_32 [2] : vector<2x8x8xf32> to vector<2x8xf32>
    %54 = vector.shape_cast %53 : vector<2x8xf32> to vector<2x8x1xf32>
    %55 = tpu.reciprocal %54 {approx = true} : vector<2x8x1xf32> -> vector<2x8x1xf32>
    %56 = vector.broadcast %55 : vector<2x8x1xf32> to vector<2x8x8xf32>
    %57 = arith.mulf %52, %56 : vector<2x8x8xf32>
    "tpu.trace_start"() <{level = 10 : i32, message = "bqk,bkd->bqd"}> : () -> ()
    %cst_33 = arith.constant dense<0.000000e+00> : vector<2x8x16xf32>
    %58 = tpu.matmul %57, %40, %cst_33 {dimension_numbers = #tpu.dot_dimension_numbers<[2], [1], [1], [2], [0, 0, 0, 1, 1, 2], [0], [0]>} : vector<2x8x8xf32>, vector<2x8x16xf32>, vector<2x8x16xf32> -> vector<2x8x16xf32>
    "tpu.trace_stop"() : () -> ()
    %59 = vector.shape_cast %58 : vector<2x8x16xf32> to vector<16x16xf32>
    %c0_34 = arith.constant 0 : index
    %c0_35 = arith.constant 0 : index
    %c0_36 = arith.constant 0 : index
    %60 = vector.load %arg9[%c0_34, %c0_35, %c0_36] : memref<2x16x32xf32, #tpu.memory_space<vmem>>, vector<1x16x32xf32>
    %61 = vector.shape_cast %60 : vector<1x16x32xf32> to vector<16x32xf32>
    %cst_37 = arith.constant dense<0.000000e+00> : vector<16x32xf32>
    %62 = tpu.matmul %59, %61, %cst_37 {dimension_numbers = #tpu.dot_dimension_numbers<[1], [0], [0], [1], [0, 0, 1, 1], [], []>} : vector<16x16xf32>, vector<16x32xf32>, vector<16x32xf32> -> vector<16x32xf32>
    %63 = arith.addf %16, %62 : vector<16x32xf32>
    %c1 = arith.constant 1 : index
    %c0_38 = arith.constant 0 : index
    %c0_39 = arith.constant 0 : index
    %64 = vector.load %arg3[%c1, %c0_38, %c0_39] : memref<2x32x16xf32, #tpu.memory_space<vmem>>, vector<1x32x16xf32>
    %65 = vector.shape_cast %64 : vector<1x32x16xf32> to vector<32x16xf32>
    %cst_40 = arith.constant dense<0.000000e+00> : vector<16x16xf32>
    %66 = tpu.matmul %11, %65, %cst_40 {dimension_numbers = #tpu.dot_dimension_numbers<[1], [0], [0], [1], [0, 0, 1, 1], [], []>} : vector<16x32xf32>, vector<32x16xf32>, vector<16x16xf32> -> vector<16x16xf32>
    %c1_41 = arith.constant 1 : index
    %c0_42 = arith.constant 0 : index
    %c0_43 = arith.constant 0 : index
    %67 = vector.load %arg6[%c1_41, %c0_42, %c0_43] : memref<2x1x16xf32, #tpu.memory_space<vmem>>, vector<1x1x16xf32>
    %68 = vector.shape_cast %67 : vector<1x1x16xf32> to vector<1x16xf32>
    %69 = vector.broadcast %68 : vector<1x16xf32> to vector<16x16xf32>
    %70 = arith.addf %66, %69 : vector<16x16xf32>
    %71 = vector.shape_cast %70 : vector<16x16xf32> to vector<2x8x16xf32>
    %c1_44 = arith.constant 1 : index
    %c0_45 = arith.constant 0 : index
    %c0_46 = arith.constant 0 : index
    %72 = vector.load %arg4[%c1_44, %c0_45, %c0_46] : memref<2x32x16xf32, #tpu.memory_space<vmem>>, vector<1x32x16xf32>
    %73 = vector.shape_cast %72 : vector<1x32x16xf32> to vector<32x16xf32>
    %cst_47 = arith.constant dense<0.000000e+00> : vector<16x16xf32>
    %74 = tpu.matmul %11, %73, %cst_47 {dimension_numbers = #tpu.dot_dimension_numbers<[1], [0], [0], [1], [0, 0, 1, 1], [], []>} : vector<16x32xf32>, vector<32x16xf32>, vector<16x16xf32> -> vector<16x16xf32>
    %c1_48 = arith.constant 1 : index
    %c0_49 = arith.constant 0 : index
    %c0_50 = arith.constant 0 : index
    %75 = vector.load %arg7[%c1_48, %c0_49, %c0_50] : memref<2x1x16xf32, #tpu.memory_space<vmem>>, vector<1x1x16xf32>
    %76 = vector.shape_cast %75 : vector<1x1x16xf32> to vector<1x16xf32>
    %77 = vector.broadcast %76 : vector<1x16xf32> to vector<16x16xf32>
    %78 = arith.addf %74, %77 : vector<16x16xf32>
    %79 = vector.shape_cast %78 : vector<16x16xf32> to vector<2x8x16xf32>
    %c1_51 = arith.constant 1 : index
    %c0_52 = arith.constant 0 : index
    %c0_53 = arith.constant 0 : index
    %80 = vector.load %arg5[%c1_51, %c0_52, %c0_53] : memref<2x32x16xf32, #tpu.memory_space<vmem>>, vector<1x32x16xf32>
    %81 = vector.shape_cast %80 : vector<1x32x16xf32> to vector<32x16xf32>
    %cst_54 = arith.constant dense<0.000000e+00> : vector<16x16xf32>
    %82 = tpu.matmul %11, %81, %cst_54 {dimension_numbers = #tpu.dot_dimension_numbers<[1], [0], [0], [1], [0, 0, 1, 1], [], []>} : vector<16x32xf32>, vector<32x16xf32>, vector<16x16xf32> -> vector<16x16xf32>
    %c1_55 = arith.constant 1 : index
    %c0_56 = arith.constant 0 : index
    %c0_57 = arith.constant 0 : index
    %83 = vector.load %arg8[%c1_55, %c0_56, %c0_57] : memref<2x1x16xf32, #tpu.memory_space<vmem>>, vector<1x1x16xf32>
    %84 = vector.shape_cast %83 : vector<1x1x16xf32> to vector<1x16xf32>
    %85 = vector.broadcast %84 : vector<1x16xf32> to vector<16x16xf32>
    %86 = arith.addf %82, %85 : vector<16x16xf32>
    %87 = vector.shape_cast %86 : vector<16x16xf32> to vector<2x8x16xf32>
    "tpu.trace_start"() <{level = 10 : i32, message = "bqd,bkd->bqk"}> : () -> ()
    %cst_58 = arith.constant dense<0.000000e+00> : vector<2x8x8xf32>
    %88 = tpu.matmul %71, %79, %cst_58 {dimension_numbers = #tpu.dot_dimension_numbers<[2], [2], [1], [1], [0, 0, 0, 1, 1, 1], [0], [0]>} : vector<2x8x16xf32>, vector<2x8x16xf32>, vector<2x8x8xf32> -> vector<2x8x8xf32>
    "tpu.trace_stop"() : () -> ()
    %cst_59 = arith.constant 2.500000e-01 : f32
    %89 = vector.broadcast %cst_59 : f32 to vector<2x8x8xf32>
    %90 = arith.mulf %88, %89 : vector<2x8x8xf32>
    %cst_60 = arith.constant -1.000000e+30 : f32
    %91 = vector.shape_cast %15 : vector<1x8x8xi1> to vector<1x8x8xi1>
    %92 = vector.broadcast %91 : vector<1x8x8xi1> to vector<2x8x8xi1>
    %93 = vector.broadcast %cst_60 : f32 to vector<2x8x8xf32>
    %94 = arith.select %92, %90, %93 : vector<2x8x8xi1>, vector<2x8x8xf32>
    %cst_61 = arith.constant dense<0xFF800000> : vector<2x8xf32>
    %95 = vector.multi_reduction <maximumf>, %94, %cst_61 [2] : vector<2x8x8xf32> to vector<2x8xf32>
    %96 = vector.shape_cast %95 : vector<2x8xf32> to vector<2x8x1xf32>
    %97 = vector.broadcast %96 : vector<2x8x1xf32> to vector<2x8x8xf32>
    %98 = arith.subf %94, %97 : vector<2x8x8xf32>
    %99 = math.exp %98 : vector<2x8x8xf32>
    %cst_62 = arith.constant dense<0.000000e+00> : vector<2x8xf32>
    %100 = vector.multi_reduction <add>, %99, %cst_62 [2] : vector<2x8x8xf32> to vector<2x8xf32>
    %101 = vector.shape_cast %100 : vector<2x8xf32> to vector<2x8x1xf32>
    %102 = tpu.reciprocal %101 {approx = true} : vector<2x8x1xf32> -> vector<2x8x1xf32>
    %103 = vector.broadcast %102 : vector<2x8x1xf32> to vector<2x8x8xf32>
    %104 = arith.mulf %99, %103 : vector<2x8x8xf32>
    "tpu.trace_start"() <{level = 10 : i32, message = "bqk,bkd->bqd"}> : () -> ()
    %cst_63 = arith.constant dense<0.000000e+00> : vector<2x8x16xf32>
    %105 = tpu.matmul %104, %87, %cst_63 {dimension_numbers = #tpu.dot_dimension_numbers<[2], [1], [1], [2], [0, 0, 0, 1, 1, 2], [0], [0]>} : vector<2x8x8xf32>, vector<2x8x16xf32>, vector<2x8x16xf32> -> vector<2x8x16xf32>
    "tpu.trace_stop"() : () -> ()
    %106 = vector.shape_cast %105 : vector<2x8x16xf32> to vector<16x16xf32>
    %c1_64 = arith.constant 1 : index
    %c0_65 = arith.constant 0 : index
    %c0_66 = arith.constant 0 : index
    %107 = vector.load %arg9[%c1_64, %c0_65, %c0_66] : memref<2x16x32xf32, #tpu.memory_space<vmem>>, vector<1x16x32xf32>
    %108 = vector.shape_cast %107 : vector<1x16x32xf32> to vector<16x32xf32>
    %cst_67 = arith.constant dense<0.000000e+00> : vector<16x32xf32>
    %109 = tpu.matmul %106, %108, %cst_67 {dimension_numbers = #tpu.dot_dimension_numbers<[1], [0], [0], [1], [0, 0, 1, 1], [], []>} : vector<16x16xf32>, vector<16x32xf32>, vector<16x32xf32> -> vector<16x32xf32>
    %110 = arith.addf %63, %109 : vector<16x32xf32>
    %c0_68 = arith.constant 0 : index
    %c0_69 = arith.constant 0 : index
    %111 = vector.load %arg10[%c0_68, %c0_69] : memref<1x32xf32, #tpu.memory_space<vmem>>, vector<1x32xf32>
    %112 = vector.broadcast %111 : vector<1x32xf32> to vector<16x32xf32>
    %113 = arith.addf %110, %112 : vector<16x32xf32>
    %114 = arith.addf %11, %113 : vector<16x32xf32>
    %c0_70 = arith.constant 0 : index
    %c0_71 = arith.constant 0 : index
    %115 = vector.load %arg11[%c0_70, %c0_71] : memref<1x32xf32, #tpu.memory_space<vmem>>, vector<1x32xf32>
    %c0_72 = arith.constant 0 : index
    %c0_73 = arith.constant 0 : index
    %116 = vector.load %arg12[%c0_72, %c0_73] : memref<1x32xf32, #tpu.memory_space<vmem>>, vector<1x32xf32>
    %cst_74 = arith.constant dense<0.000000e+00> : vector<16xf32>
    %117 = vector.multi_reduction <add>, %114, %cst_74 [1] : vector<16x32xf32> to vector<16xf32>
    %118 = vector.shape_cast %117 : vector<16xf32> to vector<16x1xf32>
    %cst_75 = arith.constant 3.200000e+01 : f32
    %119 = vector.broadcast %cst_75 : f32 to vector<16x1xf32>
    %120 = arith.divf %118, %119 : vector<16x1xf32>
    %121 = vector.broadcast %120 : vector<16x1xf32> to vector<16x32xf32>
    %122 = arith.subf %114, %121 : vector<16x32xf32>
    %123 = arith.mulf %122, %122 : vector<16x32xf32>
    %cst_76 = arith.constant dense<0.000000e+00> : vector<16xf32>
    %124 = vector.multi_reduction <add>, %123, %cst_76 [1] : vector<16x32xf32> to vector<16xf32>
    %125 = vector.shape_cast %124 : vector<16xf32> to vector<16x1xf32>
    %cst_77 = arith.constant 3.200000e+01 : f32
    %126 = vector.broadcast %cst_77 : f32 to vector<16x1xf32>
    %127 = arith.divf %125, %126 : vector<16x1xf32>
    %128 = vector.broadcast %120 : vector<16x1xf32> to vector<16x32xf32>
    %129 = arith.subf %114, %128 : vector<16x32xf32>
    %cst_78 = arith.constant 9.99999974E-6 : f32
    %130 = vector.broadcast %cst_78 : f32 to vector<16x1xf32>
    %131 = arith.addf %127, %130 : vector<16x1xf32>
    %132 = math.rsqrt %131 : vector<16x1xf32>
    %133 = vector.broadcast %132 : vector<16x1xf32> to vector<16x32xf32>
    %134 = arith.mulf %129, %133 : vector<16x32xf32>
    %135 = vector.broadcast %115 : vector<1x32xf32> to vector<16x32xf32>
    %136 = arith.mulf %134, %135 : vector<16x32xf32>
    %137 = vector.broadcast %116 : vector<1x32xf32> to vector<16x32xf32>
    %138 = arith.addf %136, %137 : vector<16x32xf32>
    %c0_79 = arith.constant 0 : index
    %c0_80 = arith.constant 0 : index
    %139 = vector.load %arg13[%c0_79, %c0_80] : memref<32x64xf32, #tpu.memory_space<vmem>>, vector<32x64xf32>
    %cst_81 = arith.constant dense<0.000000e+00> : vector<16x64xf32>
    %140 = tpu.matmul %138, %139, %cst_81 {dimension_numbers = #tpu.dot_dimension_numbers<[1], [0], [0], [1], [0, 0, 1, 1], [], []>} : vector<16x32xf32>, vector<32x64xf32>, vector<16x64xf32> -> vector<16x64xf32>
    %c0_82 = arith.constant 0 : index
    %c0_83 = arith.constant 0 : index
    %141 = vector.load %arg14[%c0_82, %c0_83] : memref<1x64xf32, #tpu.memory_space<vmem>>, vector<1x64xf32>
    %142 = vector.broadcast %141 : vector<1x64xf32> to vector<16x64xf32>
    %143 = arith.addf %140, %142 : vector<16x64xf32>
    %cst_84 = arith.constant 0.000000e+00 : f32
    %144 = vector.broadcast %cst_84 : f32 to vector<16x64xf32>
    %145 = arith.maximumf %143, %144 : vector<16x64xf32>
    %c0_85 = arith.constant 0 : index
    %c0_86 = arith.constant 0 : index
    %146 = vector.load %arg15[%c0_85, %c0_86] : memref<64x32xf32, #tpu.memory_space<vmem>>, vector<64x32xf32>
    %cst_87 = arith.constant dense<0.000000e+00> : vector<16x32xf32>
    %147 = tpu.matmul %145, %146, %cst_87 {dimension_numbers = #tpu.dot_dimension_numbers<[1], [0], [0], [1], [0, 0, 1, 1], [], []>} : vector<16x64xf32>, vector<64x32xf32>, vector<16x32xf32> -> vector<16x32xf32>
    %c0_88 = arith.constant 0 : index
    %c0_89 = arith.constant 0 : index
    %148 = vector.load %arg16[%c0_88, %c0_89] : memref<1x32xf32, #tpu.memory_space<vmem>>, vector<1x32xf32>
    %149 = vector.broadcast %148 : vector<1x32xf32> to vector<16x32xf32>
    %150 = arith.addf %147, %149 : vector<16x32xf32>
    %151 = arith.addf %138, %150 : vector<16x32xf32>
    %c0_90 = arith.constant 0 : index
    %c0_91 = arith.constant 0 : index
    %152 = vector.load %arg17[%c0_90, %c0_91] : memref<1x32xf32, #tpu.memory_space<vmem>>, vector<1x32xf32>
    %c0_92 = arith.constant 0 : index
    %c0_93 = arith.constant 0 : index
    %153 = vector.load %arg18[%c0_92, %c0_93] : memref<1x32xf32, #tpu.memory_space<vmem>>, vector<1x32xf32>
    %cst_94 = arith.constant dense<0.000000e+00> : vector<16xf32>
    %154 = vector.multi_reduction <add>, %151, %cst_94 [1] : vector<16x32xf32> to vector<16xf32>
    %155 = vector.shape_cast %154 : vector<16xf32> to vector<16x1xf32>
    %cst_95 = arith.constant 3.200000e+01 : f32
    %156 = vector.broadcast %cst_95 : f32 to vector<16x1xf32>
    %157 = arith.divf %155, %156 : vector<16x1xf32>
    %158 = vector.broadcast %157 : vector<16x1xf32> to vector<16x32xf32>
    %159 = arith.subf %151, %158 : vector<16x32xf32>
    %160 = arith.mulf %159, %159 : vector<16x32xf32>
    %cst_96 = arith.constant dense<0.000000e+00> : vector<16xf32>
    %161 = vector.multi_reduction <add>, %160, %cst_96 [1] : vector<16x32xf32> to vector<16xf32>
    %162 = vector.shape_cast %161 : vector<16xf32> to vector<16x1xf32>
    %cst_97 = arith.constant 3.200000e+01 : f32
    %163 = vector.broadcast %cst_97 : f32 to vector<16x1xf32>
    %164 = arith.divf %162, %163 : vector<16x1xf32>
    %165 = vector.broadcast %157 : vector<16x1xf32> to vector<16x32xf32>
    %166 = arith.subf %151, %165 : vector<16x32xf32>
    %cst_98 = arith.constant 9.99999974E-6 : f32
    %167 = vector.broadcast %cst_98 : f32 to vector<16x1xf32>
    %168 = arith.addf %164, %167 : vector<16x1xf32>
    %169 = math.rsqrt %168 : vector<16x1xf32>
    %170 = vector.broadcast %169 : vector<16x1xf32> to vector<16x32xf32>
    %171 = arith.mulf %166, %170 : vector<16x32xf32>
    %172 = vector.broadcast %152 : vector<1x32xf32> to vector<16x32xf32>
    %173 = arith.mulf %171, %172 : vector<16x32xf32>
    %174 = vector.broadcast %153 : vector<1x32xf32> to vector<16x32xf32>
    %175 = arith.addf %173, %174 : vector<16x32xf32>
    %cst_99 = arith.constant 0.000000e+00 : f32
    %176 = vector.broadcast %cst_99 : f32 to vector<16x32xf32>
    %c0_100 = arith.constant 0 : index
    %c0_101 = arith.constant 0 : index
    %c0_102 = arith.constant 0 : index
    %177 = vector.load %arg19[%c0_100, %c0_101, %c0_102] : memref<2x32x16xf32, #tpu.memory_space<vmem>>, vector<1x32x16xf32>
    %178 = vector.shape_cast %177 : vector<1x32x16xf32> to vector<32x16xf32>
    %cst_103 = arith.constant dense<0.000000e+00> : vector<16x16xf32>
    %179 = tpu.matmul %175, %178, %cst_103 {dimension_numbers = #tpu.dot_dimension_numbers<[1], [0], [0], [1], [0, 0, 1, 1], [], []>} : vector<16x32xf32>, vector<32x16xf32>, vector<16x16xf32> -> vector<16x16xf32>
    %c0_104 = arith.constant 0 : index
    %c0_105 = arith.constant 0 : index
    %c0_106 = arith.constant 0 : index
    %180 = vector.load %arg22[%c0_104, %c0_105, %c0_106] : memref<2x1x16xf32, #tpu.memory_space<vmem>>, vector<1x1x16xf32>
    %181 = vector.shape_cast %180 : vector<1x1x16xf32> to vector<1x16xf32>
    %182 = vector.broadcast %181 : vector<1x16xf32> to vector<16x16xf32>
    %183 = arith.addf %179, %182 : vector<16x16xf32>
    %184 = vector.shape_cast %183 : vector<16x16xf32> to vector<2x8x16xf32>
    %c0_107 = arith.constant 0 : index
    %c0_108 = arith.constant 0 : index
    %c0_109 = arith.constant 0 : index
    %185 = vector.load %arg20[%c0_107, %c0_108, %c0_109] : memref<2x32x16xf32, #tpu.memory_space<vmem>>, vector<1x32x16xf32>
    %186 = vector.shape_cast %185 : vector<1x32x16xf32> to vector<32x16xf32>
    %cst_110 = arith.constant dense<0.000000e+00> : vector<16x16xf32>
    %187 = tpu.matmul %175, %186, %cst_110 {dimension_numbers = #tpu.dot_dimension_numbers<[1], [0], [0], [1], [0, 0, 1, 1], [], []>} : vector<16x32xf32>, vector<32x16xf32>, vector<16x16xf32> -> vector<16x16xf32>
    %c0_111 = arith.constant 0 : index
    %c0_112 = arith.constant 0 : index
    %c0_113 = arith.constant 0 : index
    %188 = vector.load %arg23[%c0_111, %c0_112, %c0_113] : memref<2x1x16xf32, #tpu.memory_space<vmem>>, vector<1x1x16xf32>
    %189 = vector.shape_cast %188 : vector<1x1x16xf32> to vector<1x16xf32>
    %190 = vector.broadcast %189 : vector<1x16xf32> to vector<16x16xf32>
    %191 = arith.addf %187, %190 : vector<16x16xf32>
    %192 = vector.shape_cast %191 : vector<16x16xf32> to vector<2x8x16xf32>
    %c0_114 = arith.constant 0 : index
    %c0_115 = arith.constant 0 : index
    %c0_116 = arith.constant 0 : index
    %193 = vector.load %arg21[%c0_114, %c0_115, %c0_116] : memref<2x32x16xf32, #tpu.memory_space<vmem>>, vector<1x32x16xf32>
    %194 = vector.shape_cast %193 : vector<1x32x16xf32> to vector<32x16xf32>
    %cst_117 = arith.constant dense<0.000000e+00> : vector<16x16xf32>
    %195 = tpu.matmul %175, %194, %cst_117 {dimension_numbers = #tpu.dot_dimension_numbers<[1], [0], [0], [1], [0, 0, 1, 1], [], []>} : vector<16x32xf32>, vector<32x16xf32>, vector<16x16xf32> -> vector<16x16xf32>
    %c0_118 = arith.constant 0 : index
    %c0_119 = arith.constant 0 : index
    %c0_120 = arith.constant 0 : index
    %196 = vector.load %arg24[%c0_118, %c0_119, %c0_120] : memref<2x1x16xf32, #tpu.memory_space<vmem>>, vector<1x1x16xf32>
    %197 = vector.shape_cast %196 : vector<1x1x16xf32> to vector<1x16xf32>
    %198 = vector.broadcast %197 : vector<1x16xf32> to vector<16x16xf32>
    %199 = arith.addf %195, %198 : vector<16x16xf32>
    %200 = vector.shape_cast %199 : vector<16x16xf32> to vector<2x8x16xf32>
    "tpu.trace_start"() <{level = 10 : i32, message = "bqd,bkd->bqk"}> : () -> ()
    %cst_121 = arith.constant dense<0.000000e+00> : vector<2x8x8xf32>
    %201 = tpu.matmul %184, %192, %cst_121 {dimension_numbers = #tpu.dot_dimension_numbers<[2], [2], [1], [1], [0, 0, 0, 1, 1, 1], [0], [0]>} : vector<2x8x16xf32>, vector<2x8x16xf32>, vector<2x8x8xf32> -> vector<2x8x8xf32>
    "tpu.trace_stop"() : () -> ()
    %cst_122 = arith.constant 2.500000e-01 : f32
    %202 = vector.broadcast %cst_122 : f32 to vector<2x8x8xf32>
    %203 = arith.mulf %201, %202 : vector<2x8x8xf32>
    %cst_123 = arith.constant -1.000000e+30 : f32
    %204 = vector.shape_cast %15 : vector<1x8x8xi1> to vector<1x8x8xi1>
    %205 = vector.broadcast %204 : vector<1x8x8xi1> to vector<2x8x8xi1>
    %206 = vector.broadcast %cst_123 : f32 to vector<2x8x8xf32>
    %207 = arith.select %205, %203, %206 : vector<2x8x8xi1>, vector<2x8x8xf32>
    %cst_124 = arith.constant dense<0xFF800000> : vector<2x8xf32>
    %208 = vector.multi_reduction <maximumf>, %207, %cst_124 [2] : vector<2x8x8xf32> to vector<2x8xf32>
    %209 = vector.shape_cast %208 : vector<2x8xf32> to vector<2x8x1xf32>
    %210 = vector.broadcast %209 : vector<2x8x1xf32> to vector<2x8x8xf32>
    %211 = arith.subf %207, %210 : vector<2x8x8xf32>
    %212 = math.exp %211 : vector<2x8x8xf32>
    %cst_125 = arith.constant dense<0.000000e+00> : vector<2x8xf32>
    %213 = vector.multi_reduction <add>, %212, %cst_125 [2] : vector<2x8x8xf32> to vector<2x8xf32>
    %214 = vector.shape_cast %213 : vector<2x8xf32> to vector<2x8x1xf32>
    %215 = tpu.reciprocal %214 {approx = true} : vector<2x8x1xf32> -> vector<2x8x1xf32>
    %216 = vector.broadcast %215 : vector<2x8x1xf32> to vector<2x8x8xf32>
    %217 = arith.mulf %212, %216 : vector<2x8x8xf32>
    "tpu.trace_start"() <{level = 10 : i32, message = "bqk,bkd->bqd"}> : () -> ()
    %cst_126 = arith.constant dense<0.000000e+00> : vector<2x8x16xf32>
    %218 = tpu.matmul %217, %200, %cst_126 {dimension_numbers = #tpu.dot_dimension_numbers<[2], [1], [1], [2], [0, 0, 0, 1, 1, 2], [0], [0]>} : vector<2x8x8xf32>, vector<2x8x16xf32>, vector<2x8x16xf32> -> vector<2x8x16xf32>
    "tpu.trace_stop"() : () -> ()
    %219 = vector.shape_cast %218 : vector<2x8x16xf32> to vector<16x16xf32>
    %c0_127 = arith.constant 0 : index
    %c0_128 = arith.constant 0 : index
    %c0_129 = arith.constant 0 : index
    %220 = vector.load %arg25[%c0_127, %c0_128, %c0_129] : memref<2x16x32xf32, #tpu.memory_space<vmem>>, vector<1x16x32xf32>
    %221 = vector.shape_cast %220 : vector<1x16x32xf32> to vector<16x32xf32>
    %cst_130 = arith.constant dense<0.000000e+00> : vector<16x32xf32>
    %222 = tpu.matmul %219, %221, %cst_130 {dimension_numbers = #tpu.dot_dimension_numbers<[1], [0], [0], [1], [0, 0, 1, 1], [], []>} : vector<16x16xf32>, vector<16x32xf32>, vector<16x32xf32> -> vector<16x32xf32>
    %223 = arith.addf %176, %222 : vector<16x32xf32>
    %c1_131 = arith.constant 1 : index
    %c0_132 = arith.constant 0 : index
    %c0_133 = arith.constant 0 : index
    %224 = vector.load %arg19[%c1_131, %c0_132, %c0_133] : memref<2x32x16xf32, #tpu.memory_space<vmem>>, vector<1x32x16xf32>
    %225 = vector.shape_cast %224 : vector<1x32x16xf32> to vector<32x16xf32>
    %cst_134 = arith.constant dense<0.000000e+00> : vector<16x16xf32>
    %226 = tpu.matmul %175, %225, %cst_134 {dimension_numbers = #tpu.dot_dimension_numbers<[1], [0], [0], [1], [0, 0, 1, 1], [], []>} : vector<16x32xf32>, vector<32x16xf32>, vector<16x16xf32> -> vector<16x16xf32>
    %c1_135 = arith.constant 1 : index
    %c0_136 = arith.constant 0 : index
    %c0_137 = arith.constant 0 : index
    %227 = vector.load %arg22[%c1_135, %c0_136, %c0_137] : memref<2x1x16xf32, #tpu.memory_space<vmem>>, vector<1x1x16xf32>
    %228 = vector.shape_cast %227 : vector<1x1x16xf32> to vector<1x16xf32>
    %229 = vector.broadcast %228 : vector<1x16xf32> to vector<16x16xf32>
    %230 = arith.addf %226, %229 : vector<16x16xf32>
    %231 = vector.shape_cast %230 : vector<16x16xf32> to vector<2x8x16xf32>
    %c1_138 = arith.constant 1 : index
    %c0_139 = arith.constant 0 : index
    %c0_140 = arith.constant 0 : index
    %232 = vector.load %arg20[%c1_138, %c0_139, %c0_140] : memref<2x32x16xf32, #tpu.memory_space<vmem>>, vector<1x32x16xf32>
    %233 = vector.shape_cast %232 : vector<1x32x16xf32> to vector<32x16xf32>
    %cst_141 = arith.constant dense<0.000000e+00> : vector<16x16xf32>
    %234 = tpu.matmul %175, %233, %cst_141 {dimension_numbers = #tpu.dot_dimension_numbers<[1], [0], [0], [1], [0, 0, 1, 1], [], []>} : vector<16x32xf32>, vector<32x16xf32>, vector<16x16xf32> -> vector<16x16xf32>
    %c1_142 = arith.constant 1 : index
    %c0_143 = arith.constant 0 : index
    %c0_144 = arith.constant 0 : index
    %235 = vector.load %arg23[%c1_142, %c0_143, %c0_144] : memref<2x1x16xf32, #tpu.memory_space<vmem>>, vector<1x1x16xf32>
    %236 = vector.shape_cast %235 : vector<1x1x16xf32> to vector<1x16xf32>
    %237 = vector.broadcast %236 : vector<1x16xf32> to vector<16x16xf32>
    %238 = arith.addf %234, %237 : vector<16x16xf32>
    %239 = vector.shape_cast %238 : vector<16x16xf32> to vector<2x8x16xf32>
    %c1_145 = arith.constant 1 : index
    %c0_146 = arith.constant 0 : index
    %c0_147 = arith.constant 0 : index
    %240 = vector.load %arg21[%c1_145, %c0_146, %c0_147] : memref<2x32x16xf32, #tpu.memory_space<vmem>>, vector<1x32x16xf32>
    %241 = vector.shape_cast %240 : vector<1x32x16xf32> to vector<32x16xf32>
    %cst_148 = arith.constant dense<0.000000e+00> : vector<16x16xf32>
    %242 = tpu.matmul %175, %241, %cst_148 {dimension_numbers = #tpu.dot_dimension_numbers<[1], [0], [0], [1], [0, 0, 1, 1], [], []>} : vector<16x32xf32>, vector<32x16xf32>, vector<16x16xf32> -> vector<16x16xf32>
    %c1_149 = arith.constant 1 : index
    %c0_150 = arith.constant 0 : index
    %c0_151 = arith.constant 0 : index
    %243 = vector.load %arg24[%c1_149, %c0_150, %c0_151] : memref<2x1x16xf32, #tpu.memory_space<vmem>>, vector<1x1x16xf32>
    %244 = vector.shape_cast %243 : vector<1x1x16xf32> to vector<1x16xf32>
    %245 = vector.broadcast %244 : vector<1x16xf32> to vector<16x16xf32>
    %246 = arith.addf %242, %245 : vector<16x16xf32>
    %247 = vector.shape_cast %246 : vector<16x16xf32> to vector<2x8x16xf32>
    "tpu.trace_start"() <{level = 10 : i32, message = "bqd,bkd->bqk"}> : () -> ()
    %cst_152 = arith.constant dense<0.000000e+00> : vector<2x8x8xf32>
    %248 = tpu.matmul %231, %239, %cst_152 {dimension_numbers = #tpu.dot_dimension_numbers<[2], [2], [1], [1], [0, 0, 0, 1, 1, 1], [0], [0]>} : vector<2x8x16xf32>, vector<2x8x16xf32>, vector<2x8x8xf32> -> vector<2x8x8xf32>
    "tpu.trace_stop"() : () -> ()
    %cst_153 = arith.constant 2.500000e-01 : f32
    %249 = vector.broadcast %cst_153 : f32 to vector<2x8x8xf32>
    %250 = arith.mulf %248, %249 : vector<2x8x8xf32>
    %cst_154 = arith.constant -1.000000e+30 : f32
    %251 = vector.shape_cast %15 : vector<1x8x8xi1> to vector<1x8x8xi1>
    %252 = vector.broadcast %251 : vector<1x8x8xi1> to vector<2x8x8xi1>
    %253 = vector.broadcast %cst_154 : f32 to vector<2x8x8xf32>
    %254 = arith.select %252, %250, %253 : vector<2x8x8xi1>, vector<2x8x8xf32>
    %cst_155 = arith.constant dense<0xFF800000> : vector<2x8xf32>
    %255 = vector.multi_reduction <maximumf>, %254, %cst_155 [2] : vector<2x8x8xf32> to vector<2x8xf32>
    %256 = vector.shape_cast %255 : vector<2x8xf32> to vector<2x8x1xf32>
    %257 = vector.broadcast %256 : vector<2x8x1xf32> to vector<2x8x8xf32>
    %258 = arith.subf %254, %257 : vector<2x8x8xf32>
    %259 = math.exp %258 : vector<2x8x8xf32>
    %cst_156 = arith.constant dense<0.000000e+00> : vector<2x8xf32>
    %260 = vector.multi_reduction <add>, %259, %cst_156 [2] : vector<2x8x8xf32> to vector<2x8xf32>
    %261 = vector.shape_cast %260 : vector<2x8xf32> to vector<2x8x1xf32>
    %262 = tpu.reciprocal %261 {approx = true} : vector<2x8x1xf32> -> vector<2x8x1xf32>
    %263 = vector.broadcast %262 : vector<2x8x1xf32> to vector<2x8x8xf32>
    %264 = arith.mulf %259, %263 : vector<2x8x8xf32>
    "tpu.trace_start"() <{level = 10 : i32, message = "bqk,bkd->bqd"}> : () -> ()
    %cst_157 = arith.constant dense<0.000000e+00> : vector<2x8x16xf32>
    %265 = tpu.matmul %264, %247, %cst_157 {dimension_numbers = #tpu.dot_dimension_numbers<[2], [1], [1], [2], [0, 0, 0, 1, 1, 2], [0], [0]>} : vector<2x8x8xf32>, vector<2x8x16xf32>, vector<2x8x16xf32> -> vector<2x8x16xf32>
    "tpu.trace_stop"() : () -> ()
    %266 = vector.shape_cast %265 : vector<2x8x16xf32> to vector<16x16xf32>
    %c1_158 = arith.constant 1 : index
    %c0_159 = arith.constant 0 : index
    %c0_160 = arith.constant 0 : index
    %267 = vector.load %arg25[%c1_158, %c0_159, %c0_160] : memref<2x16x32xf32, #tpu.memory_space<vmem>>, vector<1x16x32xf32>
    %268 = vector.shape_cast %267 : vector<1x16x32xf32> to vector<16x32xf32>
    %cst_161 = arith.constant dense<0.000000e+00> : vector<16x32xf32>
    %269 = tpu.matmul %266, %268, %cst_161 {dimension_numbers = #tpu.dot_dimension_numbers<[1], [0], [0], [1], [0, 0, 1, 1], [], []>} : vector<16x16xf32>, vector<16x32xf32>, vector<16x32xf32> -> vector<16x32xf32>
    %270 = arith.addf %223, %269 : vector<16x32xf32>
    %c0_162 = arith.constant 0 : index
    %c0_163 = arith.constant 0 : index
    %271 = vector.load %arg26[%c0_162, %c0_163] : memref<1x32xf32, #tpu.memory_space<vmem>>, vector<1x32xf32>
    %272 = vector.broadcast %271 : vector<1x32xf32> to vector<16x32xf32>
    %273 = arith.addf %270, %272 : vector<16x32xf32>
    %274 = arith.addf %175, %273 : vector<16x32xf32>
    %c0_164 = arith.constant 0 : index
    %c0_165 = arith.constant 0 : index
    %275 = vector.load %arg27[%c0_164, %c0_165] : memref<1x32xf32, #tpu.memory_space<vmem>>, vector<1x32xf32>
    %c0_166 = arith.constant 0 : index
    %c0_167 = arith.constant 0 : index
    %276 = vector.load %arg28[%c0_166, %c0_167] : memref<1x32xf32, #tpu.memory_space<vmem>>, vector<1x32xf32>
    %cst_168 = arith.constant dense<0.000000e+00> : vector<16xf32>
    %277 = vector.multi_reduction <add>, %274, %cst_168 [1] : vector<16x32xf32> to vector<16xf32>
    %278 = vector.shape_cast %277 : vector<16xf32> to vector<16x1xf32>
    %cst_169 = arith.constant 3.200000e+01 : f32
    %279 = vector.broadcast %cst_169 : f32 to vector<16x1xf32>
    %280 = arith.divf %278, %279 : vector<16x1xf32>
    %281 = vector.broadcast %280 : vector<16x1xf32> to vector<16x32xf32>
    %282 = arith.subf %274, %281 : vector<16x32xf32>
    %283 = arith.mulf %282, %282 : vector<16x32xf32>
    %cst_170 = arith.constant dense<0.000000e+00> : vector<16xf32>
    %284 = vector.multi_reduction <add>, %283, %cst_170 [1] : vector<16x32xf32> to vector<16xf32>
    %285 = vector.shape_cast %284 : vector<16xf32> to vector<16x1xf32>
    %cst_171 = arith.constant 3.200000e+01 : f32
    %286 = vector.broadcast %cst_171 : f32 to vector<16x1xf32>
    %287 = arith.divf %285, %286 : vector<16x1xf32>
    %288 = vector.broadcast %280 : vector<16x1xf32> to vector<16x32xf32>
    %289 = arith.subf %274, %288 : vector<16x32xf32>
    %cst_172 = arith.constant 9.99999974E-6 : f32
    %290 = vector.broadcast %cst_172 : f32 to vector<16x1xf32>
    %291 = arith.addf %287, %290 : vector<16x1xf32>
    %292 = math.rsqrt %291 : vector<16x1xf32>
    %293 = vector.broadcast %292 : vector<16x1xf32> to vector<16x32xf32>
    %294 = arith.mulf %289, %293 : vector<16x32xf32>
    %295 = vector.broadcast %275 : vector<1x32xf32> to vector<16x32xf32>
    %296 = arith.mulf %294, %295 : vector<16x32xf32>
    %297 = vector.broadcast %276 : vector<1x32xf32> to vector<16x32xf32>
    %298 = arith.addf %296, %297 : vector<16x32xf32>
    %c0_173 = arith.constant 0 : index
    %c0_174 = arith.constant 0 : index
    %299 = vector.load %arg29[%c0_173, %c0_174] : memref<32x64xf32, #tpu.memory_space<vmem>>, vector<32x64xf32>
    %cst_175 = arith.constant dense<0.000000e+00> : vector<16x64xf32>
    %300 = tpu.matmul %298, %299, %cst_175 {dimension_numbers = #tpu.dot_dimension_numbers<[1], [0], [0], [1], [0, 0, 1, 1], [], []>} : vector<16x32xf32>, vector<32x64xf32>, vector<16x64xf32> -> vector<16x64xf32>
    %c0_176 = arith.constant 0 : index
    %c0_177 = arith.constant 0 : index
    %301 = vector.load %arg30[%c0_176, %c0_177] : memref<1x64xf32, #tpu.memory_space<vmem>>, vector<1x64xf32>
    %302 = vector.broadcast %301 : vector<1x64xf32> to vector<16x64xf32>
    %303 = arith.addf %300, %302 : vector<16x64xf32>
    %cst_178 = arith.constant 0.000000e+00 : f32
    %304 = vector.broadcast %cst_178 : f32 to vector<16x64xf32>
    %305 = arith.maximumf %303, %304 : vector<16x64xf32>
    %c0_179 = arith.constant 0 : index
    %c0_180 = arith.constant 0 : index
    %306 = vector.load %arg31[%c0_179, %c0_180] : memref<64x32xf32, #tpu.memory_space<vmem>>, vector<64x32xf32>
    %cst_181 = arith.constant dense<0.000000e+00> : vector<16x32xf32>
    %307 = tpu.matmul %305, %306, %cst_181 {dimension_numbers = #tpu.dot_dimension_numbers<[1], [0], [0], [1], [0, 0, 1, 1], [], []>} : vector<16x64xf32>, vector<64x32xf32>, vector<16x32xf32> -> vector<16x32xf32>
    %c0_182 = arith.constant 0 : index
    %c0_183 = arith.constant 0 : index
    %308 = vector.load %arg32[%c0_182, %c0_183] : memref<1x32xf32, #tpu.memory_space<vmem>>, vector<1x32xf32>
    %309 = vector.broadcast %308 : vector<1x32xf32> to vector<16x32xf32>
    %310 = arith.addf %307, %309 : vector<16x32xf32>
    %311 = arith.addf %298, %310 : vector<16x32xf32>
    %c0_184 = arith.constant 0 : index
    %c0_185 = arith.constant 0 : index
    %312 = vector.load %arg33[%c0_184, %c0_185] : memref<1x32xf32, #tpu.memory_space<vmem>>, vector<1x32xf32>
    %c0_186 = arith.constant 0 : index
    %c0_187 = arith.constant 0 : index
    %313 = vector.load %arg34[%c0_186, %c0_187] : memref<1x32xf32, #tpu.memory_space<vmem>>, vector<1x32xf32>
    %cst_188 = arith.constant dense<0.000000e+00> : vector<16xf32>
    %314 = vector.multi_reduction <add>, %311, %cst_188 [1] : vector<16x32xf32> to vector<16xf32>
    %315 = vector.shape_cast %314 : vector<16xf32> to vector<16x1xf32>
    %cst_189 = arith.constant 3.200000e+01 : f32
    %316 = vector.broadcast %cst_189 : f32 to vector<16x1xf32>
    %317 = arith.divf %315, %316 : vector<16x1xf32>
    %318 = vector.broadcast %317 : vector<16x1xf32> to vector<16x32xf32>
    %319 = arith.subf %311, %318 : vector<16x32xf32>
    %320 = arith.mulf %319, %319 : vector<16x32xf32>
    %cst_190 = arith.constant dense<0.000000e+00> : vector<16xf32>
    %321 = vector.multi_reduction <add>, %320, %cst_190 [1] : vector<16x32xf32> to vector<16xf32>
    %322 = vector.shape_cast %321 : vector<16xf32> to vector<16x1xf32>
    %cst_191 = arith.constant 3.200000e+01 : f32
    %323 = vector.broadcast %cst_191 : f32 to vector<16x1xf32>
    %324 = arith.divf %322, %323 : vector<16x1xf32>
    %325 = vector.broadcast %317 : vector<16x1xf32> to vector<16x32xf32>
    %326 = arith.subf %311, %325 : vector<16x32xf32>
    %cst_192 = arith.constant 9.99999974E-6 : f32
    %327 = vector.broadcast %cst_192 : f32 to vector<16x1xf32>
    %328 = arith.addf %324, %327 : vector<16x1xf32>
    %329 = math.rsqrt %328 : vector<16x1xf32>
    %330 = vector.broadcast %329 : vector<16x1xf32> to vector<16x32xf32>
    %331 = arith.mulf %326, %330 : vector<16x32xf32>
    %332 = vector.broadcast %312 : vector<1x32xf32> to vector<16x32xf32>
    %333 = arith.mulf %331, %332 : vector<16x32xf32>
    %334 = vector.broadcast %313 : vector<1x32xf32> to vector<16x32xf32>
    %335 = arith.addf %333, %334 : vector<16x32xf32>
    %c0_193 = arith.constant 0 : index
    %c0_194 = arith.constant 0 : index
    %336 = vector.load %arg35[%c0_193, %c0_194] : memref<32x128xf32, #tpu.memory_space<vmem>>, vector<32x128xf32>
    %cst_195 = arith.constant dense<0.000000e+00> : vector<16x128xf32>
    %337 = tpu.matmul %335, %336, %cst_195 {dimension_numbers = #tpu.dot_dimension_numbers<[1], [0], [0], [1], [0, 0, 1, 1], [], []>} : vector<16x32xf32>, vector<32x128xf32>, vector<16x128xf32> -> vector<16x128xf32>
    %c0_196 = arith.constant 0 : index
    %c0_197 = arith.constant 0 : index
    %338 = vector.load %arg36[%c0_196, %c0_197] : memref<1x128xf32, #tpu.memory_space<vmem>>, vector<1x128xf32>
    %339 = vector.broadcast %338 : vector<1x128xf32> to vector<16x128xf32>
    %340 = arith.addf %337, %339 : vector<16x128xf32>
    %cst_198 = arith.constant dense<0xFF800000> : vector<16xf32>
    %341 = vector.multi_reduction <maximumf>, %340, %cst_198 [1] : vector<16x128xf32> to vector<16xf32>
    %342 = vector.shape_cast %341 : vector<16xf32> to vector<16x1xf32>
    %343 = vector.broadcast %342 : vector<16x1xf32> to vector<16x128xf32>
    %344 = arith.subf %340, %343 : vector<16x128xf32>
    %345 = math.exp %344 : vector<16x128xf32>
    %cst_199 = arith.constant dense<0.000000e+00> : vector<16xf32>
    %346 = vector.multi_reduction <add>, %345, %cst_199 [1] : vector<16x128xf32> to vector<16xf32>
    %347 = vector.shape_cast %346 : vector<16xf32> to vector<16x1xf32>
    %348 = math.log %347 : vector<16x1xf32>
    %349 = vector.broadcast %348 : vector<16x1xf32> to vector<16x128xf32>
    %350 = arith.subf %344, %349 : vector<16x128xf32>
    %c0_200 = arith.constant 0 : index
    %c0_201 = arith.constant 0 : index
    %351 = vector.load %arg37[%c0_200, %c0_201] : memref<16x128xf32, #tpu.memory_space<vmem>>, vector<16x128xf32>
    tpu.vector_store %arg37[%c0_200, %c0_201], %350 {strides = array<i32>} : memref<16x128xf32, #tpu.memory_space<vmem>>, vector<16x128xf32>,
    return
  }
}

</mosaic_0001>

<bundles_post_ra>
// kernel: transformer_forward.1
= control target key start
LH: loop header
LB: loop body
LE: loop exit
PB: predicated region body
PF: predicated region fallthrough
CT: control target
= control target key end

     0   :  { %v1986_v0 = vmov 0   ;;  %s1987_s6 = smov 2   ;;  %vm184_vm0 = vcmask 1041408   ;;  %s1988_s10 = smov 3   ;;  %v156_v13 = vlaneseq  ;;  %vm177_vm1 = vcmask 408576   ;;  %s2493_s0 = inlined_call_operand.smem [shape: u32[38], index: -1, kind: input, shape index: {}] }
   0x1   :  { %1900 = vset.pattern.permute.xlu0 %v1986_v0  ;;  %s1_s5 = sld [smem:[%s2493_s0]]   ;;  %s1989_s14 = smov 4   ;;  %v1991_v16 = vmov 0.0   ;;  %vm228_vm4 = vcmask 261120   ;;  %vm320_vm5 = vcmask 130048   ;;  %vm379_vm7 = vcmask 64512  }
   0x2   :  { %s1719_s9 = sld [smem:[%s2493_s0 + %s1987_s6]]   ;;  %s1990_s18 = smov 5   ;;  %v2056_v14 = vand.u32 127, %v156_v13  ;;  %v218_v56 = vshrl.u32 %v156_v13, 7  ;;  %vm856_vm15 = vcmask 523264  }
   0x3   :  { %s2040_s13 = sld [smem:[%s2493_s0 + %s1988_s10]]   ;;  %s1992_s22 = smov 6  }
   0x4   :  { %s2045_s17 = sld [smem:[%s2493_s0 + %s1989_s14]]   ;;  %s1993_s26 = smov 1   ;;  %vm2120_vm6 = vcmp.le.s32.totalorder %v2056_v14, %v218_v56 }
   0x5   :  { %s2050_s21 = sld [smem:[%s2493_s0 + %s1990_s18]]   ;;  %s1994_s30 = smov 7  }
   0x6   :  { %s2063_s25 = sld [smem:[%s2493_s0 + %s1992_s22]]   ;;  %s1995_s4 = smov 8  }
   0x7   :  { %v154_v1 = vld [vmem:[%s1_s5] sm:$0xff]  ;;  %v155_v6 = vld [vmem:[%s1_s5 + $0x8] sm:$0xff]  ;;  %s1718_s29 = sld [smem:[%s2493_s0 + %s1993_s26]]   ;;  %s1996_s8 = smov 9  }
   0x8   :  { %159 = vperm.xlu0 %1900, %v154_v1   ;;  %v176_v2 = vld [vmem:[%s1719_s9 + $0x30] sm:$0x3]  ;;  %v175_v3 = vld [vmem:[%s1719_s9 + $0x28] sm:$0xff]  ;;  %v174_v4 = vld [vmem:[%s1719_s9 + $0x20] sm:$0xff]  ;;  %s2080_s3 = sld [smem:[%s2493_s0 + %s1994_s30]]   ;;  %s1997_s12 = smov 10  }
   0x9   :  { %1757 = vmatpush.msk.msra.mxu0 %vm184_vm0, %v176_v2  ;;  %v173_v5 = vld [vmem:[%s1719_s9 + $0x18] sm:$0xff]  ;;  %v172_v7 = vld [vmem:[%s1719_s9 + $0x10] sm:$0xff]  ;;  %v171_v8 = vld [vmem:[%s1719_s9 + $0x8] sm:$0xff]  ;;  %s2087_s7 = sld [smem:[%s2493_s0 + %s1995_s4]]   ;;  %s1998_s16 = smov 11  }
   0xa   :  { %v170_v9 = vld [vmem:[%s1719_s9] sm:$0xff]  ;;  %v223_v10 = vld [vmem:[%s2040_s13 + $0x18] sm:$0xff]  ;;  %v222_v20 = vld [vmem:[%s2040_s13 + $0x10] sm:$0xff]  ;;  %s2157_s11 = sld [smem:[%s2493_s0 + %s1996_s8]]   ;;  %s2000_s20 = smov 12  }
   0xb   :  { %198 = vmatpush.msra.mxu0 %v175_v3  ;;  %v261_v11 = vld [vmem:[%s2045_s17 + $0x18] sm:$0xff]  ;;  %247 = vmatpush.msra.mxu1 %v223_v10  ;;  %v260_v21 = vld [vmem:[%s2045_s17 + $0x10] sm:$0xff]  ;;  %v221_v23 = vld [vmem:[%s2040_s13 + $0x8] sm:$0xff]  ;;  %s1727_s15 = sld [smem:[%s2493_s0 + %s1997_s12]]   ;;  %s2001_s24 = smov 14  }
   0xc   :  { %v292_v12 = vld [vmem:[%s2050_s21 + $0x18] sm:$0xff]  ;;  %278 = vmatpush.msra.mxu2 %v261_v11  ;;  %v291_v22 = vld [vmem:[%s2050_s21 + $0x10] sm:$0xff]  ;;  %v259_v24 = vld [vmem:[%s2045_s17 + $0x8] sm:$0xff]  ;;  %s2188_s19 = sld [smem:[%s2493_s0 + %s1998_s16]]   ;;  %s2002_s28 = smov 13  }
   0xd   :  { %199 = vmatpush.msra.mxu0 %v174_v4  ;;  %309 = vmatpush.msra.mxu3 %v292_v12  ;;  %v290_v25 = vld [vmem:[%s2050_s21 + $0x8] sm:$0xff]  ;;  %v220_v26 = vld [vmem:[%s2040_s13] sm:$0xff]  ;;  %v1782_v50 = vld [vmem:[%s2045_s17 + $0x38] sm:$0xff]  ;;  %s2200_s23 = sld [smem:[%s2493_s0 + %s2000_s20]]   ;;  %s2003_s2 = smov 15  }
   0xe   :  { %248 = vmatpush.msra.mxu1 %v222_v20  ;;  %279 = vmatpush.msra.mxu2 %v260_v21  ;;  %v258_v27 = vld [vmem:[%s2045_s17] sm:$0xff]  ;;  %v214_v34 = vld [vmem:[%s1718_s29 + $0x8] sm:$0xff]  ;;  %v1781_v53 = vld [vmem:[%s2045_s17 + $0x30] sm:$0xff]  ;;  %s2210_s27 = sld [smem:[%s2493_s0 + %s2001_s24]]   ;;  %s2004_s6 = smov 16  }
   0xf   :  { %200 = vmatpush.msra.mxu0 %v173_v5  ;;  %310 = vmatpush.msra.mxu3 %v291_v22  ;;  %v289_v28 = vld [vmem:[%s2050_s21] sm:$0xff]  ;;  %v1780_v54 = vld [vmem:[%s2045_s17 + $0x28] sm:$0xff]  ;;  %v1775_v21 = vld [vmem:[%s2040_s13 + $0x38] sm:$0xff]  ;;  %s1730_s1 = sld [smem:[%s2493_s0 + %s2002_s28]]   ;;  %s2005_s10 = smov 17  }
  0x10   :  { %162 = vperm.xlu0 %1900, %v155_v6   ;;  %249 = vmatpush.msra.mxu1 %v221_v23  ;;  %v213_v30 = vld [vmem:[%s1718_s29] sm:$0xff]  ;;  %v1774_v22 = vld [vmem:[%s2040_s13 + $0x30] sm:$0xff]  ;;  %v1773_v23 = vld [vmem:[%s2040_s13 + $0x28] sm:$0xff]  ;;  %s2219_s5 = sld [smem:[%s2493_s0 + %s2003_s2]]   ;;  %s2006_s14 = smov 18  }
  0x11   :  { %201 = vmatpush.msra.mxu0 %v172_v7  ;;  %280 = vmatpush.msra.mxu2 %v259_v24  ;;  %v1902_v37 = vld [vmem:[%s2080_s3] ss:$0 sm:$0xff]  ;;  %v1904_v2 = vld [vmem:[%s2080_s3 + $0x1] ss:$0 sm:$0xff]  ;;  %s1733_s9 = sld [smem:[%s2493_s0 + %s2004_s6]]   ;;  %s2007_s18 = smov 23  }
  0x12   :  { %311 = vmatpush.msra.mxu3 %v290_v25  ;;  %250 = vmatpush.msra.mxu1 %v220_v26  ;;  %v1903_v38 = vld [vmem:[%s2087_s7] ss:$0 sm:$0xff]  ;;  %s2008_s22 = smov 19   ;;  %s2009_s26 = smov 20  }
  0x13   :  { %202 = vmatpush.msra.mxu0 %v171_v8  ;;  %281 = vmatpush.msra.mxu2 %v258_v27  ;;  %v1901_v40 = vld [vmem:[%s2063_s25] ss:$0 sm:$0xff]  ;;  %s2278_s29 = sld [smem:[%s2493_s0 + %s2009_s26]]   ;;  %s2010_s30 = smov 21  }
  0x14   :  { %312 = vmatpush.msra.mxu3 %v289_v28  ;;  %v1779_v55 = vld [vmem:[%s2045_s17 + $0x20] sm:$0xff]  ;;  %s2250_s17 = sld [smem:[%s2493_s0 + %s2006_s14]]   ;;  %s2011_s4 = smov 24  }
  0x15   :  { %203 = vmatpush.msra.mxu0 %v170_v9  ;;  %v1786_v20 = vld [vmem:[%s2050_s21 + $0x20] sm:$0xff]  ;;  %s2283_s3 = sld [smem:[%s2493_s0 + %s2010_s30]]   ;;  %s2012_s8 = smov 22  }
  0x16   :  { %v1772_v24 = vld [vmem:[%s2040_s13 + $0x20] sm:$0xff]  ;;  %s2245_s13 = sld [smem:[%s2493_s0 + %s2005_s10]]   ;;  %s2013_s12 = smov 25  }
  0x17   :  { %s2014_s16 = smov 26   ;;  %s2015_s20 = smov 27  }
  0x18   :  { %s2016_s24 = smov 28   ;;  %s2017_s28 = smov 30  }
  0x19   :  { %s2018_s2 = smov 29   ;;  %s2019_s6 = smov 31  }
  0x1a   :  { %s2020_s10 = smov 32   ;;  %s2021_s14 = smov 33  }
  0x1b   :  { %s2024_s26 = smov 35   ;;  %s2025_s30 = smov 37  }
  0x7a   :  { %v160_v15 = vpop.permute.xlu0 %159 }
  0x7b   :  { %vm164_vm2 = vcmp.eq.s32.totalorder %v160_v15, %v2056_v14 }
  0x7c   :  { %v1755_v17 = vsel %vm164_vm2, 1.0, %v1991_v16 }
  0x7d   :  { %1758 = vmatmul.msk.f32.vlgmr.msra.gmra.mxu0 %vm177_vm1, %v1755_v17  ;;  %v1789_v17 = vld [vmem:[%s2050_s21 + $0x38] sm:$0xff] }
  0x82   :  { %v163_v18 = vpop.permute.xlu0 %162 }
  0x83   :  { %vm165_vm3 = vcmp.eq.s32.totalorder %v163_v18, %v2056_v14  ;;  %v1788_v18 = vld [vmem:[%s2050_s21 + $0x30] sm:$0xff] }
  0x84   :  { %v1756_v19 = vsel %vm165_vm3, 1.0, %v1991_v16 }
  0x85   :  { %1759 = vmatmul.msk.f32.gmra.mxu0 %vm177_vm1, %v1756_v19  ;;  %v1787_v19 = vld [vmem:[%s2050_s21 + $0x28] sm:$0xff]  ;;  %s2268_s21 = sld [smem:[%s2493_s0 + %s2007_s18]]   ;;  %s2022_s18 = smov 34  }
  0xfa   :  { %v205_v29 = vpop.f32.mrf.mxu0 }
  0xfb   :  { %v211_v31 = vmul.f32 5.656854, %v205_v29 }
  0xfd   :  { %v2082_v32 = vadd.f32 %v213_v30, %v211_v31 }
  0xff   :  { %1760 = vmatmul.msk.f32.vlgmr.msra.gmra.mxu1 %vm228_vm4, %v2082_v32  ;;  %1762 = vmatmul.msk.f32.vlgmr.msra.gmra.mxu2 %vm228_vm4, %v2082_v32 }
 0x100   :  { %1764 = vmatmul.msk.f32.vlgmr.msra.gmra.mxu3 %vm228_vm4, %v2082_v32 }
 0x102   :  { %v208_v33 = vpop.f32.mrf.mxu0 }
 0x103   :  { %v212_v35 = vmul.f32 5.656854, %v208_v33  ;;  %v1905_v33 = vld [vmem:[%s2087_s7 + $0x1] ss:$0 sm:$0xff]  ;;  %s2302_s7 = sld [smem:[%s2493_s0 + %s2011_s4]]  }
 0x105   :  { %v2095_v36 = vadd.f32 %v214_v34, %v212_v35 }
 0x107   :  { %1761 = vmatmul.msk.f32.gmra.mxu1 %vm228_vm4, %v2095_v36  ;;  %1763 = vmatmul.msk.f32.gmra.mxu2 %vm228_vm4, %v2095_v36 }
 0x108   :  { %1765 = vmatmul.msk.f32.gmra.mxu3 %vm228_vm4, %v2095_v36 }
 0x17c   :  { %v252_v39 = vpop.f32.mrf.mxu1 }
 0x17d   :  { %v253_v45 = vadd.f32 %v1901_v40, %v252_v39 }
 0x182   :  { %v283_v41 = vpop.f32.mrf.mxu2 }
 0x183   :  { %v284_v42 = vadd.f32 %v1902_v37, %v283_v41  ;;  %v314_v43 = vpop.f32.mrf.mxu3 }
 0x184   :  { %v315_v44 = vadd.f32 %v1903_v38, %v314_v43  ;;  %v255_v47 = vpop.f32.mrf.mxu1  ;;  %v449_v43 = vld [vmem:[%s2157_s11 + $0x8] sm:$0xff] }
 0x185   :  { %1766 = vmatpush.xpose.msk.msrb.mxu1 %vm320_vm5, %v284_v42  ;;  %v256_v52 = vadd.f32 %v1901_v40, %v255_v47 }
 0x186   :  { %420 = vmatpush.msrb.mxu3 %v315_v44  ;;  %v448_v44 = vld [vmem:[%s2157_s11] sm:$0xff] }
 0x188   :  { %1767 = vmatmul.msk.f32.vlgmr.msrb.gmra.mxu1 %vm320_vm5, %v253_v45  ;;  %538 = vmatpush.msra.mxu3 %v1789_v17 }
 0x18a   :  { %v286_v46 = vpop.f32.mrf.mxu2  ;;  %539 = vmatpush.msra.mxu3 %v1788_v18 }
 0x18b   :  { %v287_v48 = vadd.f32 %v1902_v37, %v286_v46  ;;  %v317_v49 = vpop.f32.mrf.mxu3 }
 0x18c   :  { %v318_v51 = vadd.f32 %v1903_v38, %v317_v49  ;;  %540 = vmatpush.msra.mxu3 %v1787_v19  ;;  %v1906_v38 = vld [vmem:[%s2063_s25 + $0x1] ss:$0 sm:$0xff]  ;;  %s2273_s25 = sld [smem:[%s2493_s0 + %s2008_s22]]   ;;  %s2023_s22 = smov 36  }
 0x18d   :  { %1768 = vmatpush.xpose.msk.msrb.mxu2 %vm320_vm5, %v287_v48 }
 0x18e   :  { %443 = vmatpush.msra.mxu1 %v318_v51  ;;  %541 = vmatpush.msra.mxu3 %v1786_v20 }
 0x190   :  { %1769 = vmatmul.msk.f32.vlgmr.msrb.gmra.mxu2 %vm320_vm5, %v256_v52  ;;  %472 = vmatpush.msrb.mxu1 %v1775_v21 }
 0x191   :  { %505 = vmatpush.msra.mxu2 %v1782_v50 }
 0x192   :  { %473 = vmatpush.msrb.mxu1 %v1774_v22 }
 0x193   :  { %506 = vmatpush.msra.mxu2 %v1781_v53 }
 0x194   :  { %474 = vmatpush.msrb.mxu1 %v1773_v23 }
 0x195   :  { %507 = vmatpush.msra.mxu2 %v1780_v54 }
 0x196   :  { %475 = vmatpush.msrb.mxu1 %v1772_v24 }
 0x197   :  { %508 = vmatpush.msra.mxu2 %v1779_v55 }
 0x198   :  { %1784 = vmatmul.msk.f32.vlgmr.msra.gmra.mxu2 %vm228_vm4, %v2082_v32 }
 0x1a0   :  { %1785 = vmatmul.msk.f32.gmra.mxu2 %vm228_vm4, %v2095_v36 }
 0x205   :  { %v344_v58 = vpop.f32.mrf.mxu1 }
 0x206   :  { %v373_v59 = vmul.f32 0.25, %v344_v58 }
 0x208   :  { %v377_v60 = vsel %vm2120_vm6, %v373_v59, -1e+30 }
 0x209   :  { %v380_v61 = vsel %vm379_vm7, %v377_v60, -inf }
 0x20a   :  { %381 = vmax.xlane.f32.xlu2 %v380_v61 }
 0x213   :  { %v370_v62 = vpop.f32.mrf.mxu2 }
 0x214   :  { %v374_v63 = vmul.f32 0.25, %v370_v62 }
 0x216   :  { %v378_v0 = vsel %vm2120_vm6, %v374_v63, -1e+30 }
 0x217   :  { %v383_v1 = vsel %vm379_vm7, %v378_v0, -inf }
 0x218   :  { %384 = vmax.xlane.f32.xlu1 %v383_v1 }
 0x21b   :  { %v510_v3 = vpop.f32.mrf.mxu2 }
 0x21c   :  { %v511_v4 = vadd.f32 %v1904_v2, %v510_v3 }
 0x21e   :  { %1793 = vmatpush.xpose.msk.msrb.mxu0 %vm320_vm5, %v511_v4 }
 0x223   :  { %v513_v5 = vpop.f32.mrf.mxu2 }
 0x224   :  { %v514_v6 = vadd.f32 %v1904_v2, %v513_v5  ;;  %v1800_v2 = vld [vmem:[%s2157_s11 + $0x18] sm:$0xff] }
 0x226   :  { %1795 = vmatpush.xpose.msk.msra.mxu0 %vm320_vm5, %v514_v6 }
 0x27d   :  { %v382_v7 = vpop.xlane.xlu2 %381 }
 0x27e   :  { %v386_v8 = vsub.f32 %v377_v60, %v382_v7 }
 0x280   :  { %v388_v9 = vmul.f32 1.442695, %v386_v8 }
 0x282   :  { %1928 = vpow2.f32 %v388_v9  ;;  %v1799_v9 = vld [vmem:[%s2157_s11 + $0x10] sm:$0xff]  ;;  %s2310_s11 = sld [smem:[%s2493_s0 + %s2012_s8]]  }
 0x288   :  { %v1929_v10 = vpop.eup %1928 }
 0x289   :  { %v392_v11 = vsel %vm379_vm7, %v1929_v10, 0.0 }
 0x28a   :  { %393 = vadd.xlane.f32.xlu2 %v392_v11 }
 0x28b   :  { %v385_v12 = vpop.xlane.xlu1 %384 }
 0x28c   :  { %v387_v13 = vsub.f32 %v378_v0, %v385_v12  ;;  %v1907_v12 = vld [vmem:[%s1727_s15] ss:$0 sm:$0xff]  ;;  %s2372_s15 = sld [smem:[%s2493_s0 + %s2013_s12]]  }
 0x28e   :  { %v390_v14 = vmul.f32 1.442695, %v387_v13 }
 0x290   :  { %1930 = vpow2.f32 %v390_v14 }
 0x296   :  { %v1931_v15 = vpop.eup %1930 }
 0x297   :  { %v395_v16 = vsel %vm379_vm7, %v1931_v15, 0.0 }
 0x298   :  { %396 = vadd.xlane.f32.xlu1 %v395_v16 }
 0x2fd   :  { %v394_v25 = vpop.xlane.xlu2 %393 }
 0x2fe   :  { %1932 = vrcp.f32 %v394_v25  ;;  %v1999_v25 = vmov 32.0  }
 0x304   :  { %v1933_v26 = vpop.eup %1932 }
 0x305   :  { %v400_v27 = vmul.f32 %v1933_v26, %v1929_v10 }
 0x307   :  { %1770 = vmatmul.msk.f32.vlgmr.msrb.gmra.mxu3 %vm379_vm7, %v400_v27 }
 0x308   :  { %696 = vmatpush.msrb.mxu3 %v1800_v2 }
 0x30a   :  { %697 = vmatpush.msrb.mxu3 %v1799_v9 }
 0x30b   :  { %v397_v28 = vpop.xlane.xlu1 %396 }
 0x30c   :  { %1934 = vrcp.f32 %v397_v28 }
 0x30f   :  { %1791 = vmatmul.msk.f32.vlgmr.msra.gmra.mxu3 %vm228_vm4, %v2082_v32 }
 0x312   :  { %v1935_v29 = vpop.eup %1934 }
 0x313   :  { %v401_v30 = vmul.f32 %v1935_v29, %v1931_v15 }
 0x315   :  { %1771 = vmatmul.msk.f32.vlgmr.msra.gmra.mxu1 %vm379_vm7, %v401_v30 }
 0x317   :  { %1792 = vmatmul.msk.f32.gmra.mxu3 %vm228_vm4, %v2095_v36 }
 0x31d   :  { %1777 = vmatmul.msk.f32.vlgmr.msrb.gmra.mxu1 %vm228_vm4, %v2082_v32 }
 0x325   :  { %1778 = vmatmul.msk.f32.gmra.mxu1 %vm228_vm4, %v2095_v36 }
 0x38a   :  { %v422_v31 = vpop.f32.mrf.mxu3 }
 0x392   :  { %v445_v34 = vpop.f32.mrf.mxu1  ;;  %v543_v35 = vpop.f32.mrf.mxu3 }
 0x393   :  { %v544_v37 = vadd.f32 %v1905_v33, %v543_v35 }
 0x395   :  { %645 = vmatpush.msra.mxu1 %v544_v37 }
 0x39a   :  { %v477_v39 = vpop.f32.mrf.mxu1  ;;  %v546_v40 = vpop.f32.mrf.mxu3 }
 0x39b   :  { %v478_v41 = vadd.f32 %v1906_v38, %v477_v39  ;;  %v547_v42 = vadd.f32 %v1905_v33, %v546_v40 }
 0x39d   :  { %1794 = vmatmul.msk.f32.vlgmr.msrb.gmra.mxu0 %vm320_vm5, %v478_v41  ;;  %668 = vmatpush.msrb.mxu2 %v547_v42  ;;  %v808_v42 = vld [vmem:[%s1730_s1 + $0x18] sm:$0xff] }
 0x39e   :  { %725 = vmatpush.msrb.mxu0 %v449_v43  ;;  %831 = vmatpush.msrb.mxu1 %v808_v42  ;;  %v807_v43 = vld [vmem:[%s1730_s1 + $0x10] sm:$0xff] }
 0x3a0   :  { %726 = vmatpush.msrb.mxu0 %v448_v44  ;;  %832 = vmatpush.msrb.mxu1 %v807_v43  ;;  %v806_v44 = vld [vmem:[%s1730_s1 + $0x8] sm:$0xff] }
 0x3a2   :  { %v480_v45 = vpop.f32.mrf.mxu1  ;;  %833 = vmatpush.msrb.mxu1 %v806_v44 }
 0x3a3   :  { %v481_v46 = vadd.f32 %v1906_v38, %v480_v45  ;;  %v805_v45 = vld [vmem:[%s1730_s1] sm:$0xff]  ;;  %s2428_s1 = sld [smem:[%s2493_s0 + %s2017_s28]]  }
 0x3a4   :  { %834 = vmatpush.msrb.mxu1 %v805_v45 }
 0x3a5   :  { %1796 = vmatmul.msk.f32.vlgmr.msra.gmra.mxu0 %vm320_vm5, %v481_v46 }
 0x3ad   :  { %1803 = vmatmul.msk.f32.vlgmr.msrb.gmra.mxu0 %vm320_vm5, %v422_v31 }
 0x3b5   :  { %1804 = vmatmul.msk.f32.gmra.mxu0 %vm320_vm5, %v445_v34 }
 0x41a   :  { %v572_v47 = vpop.f32.mrf.mxu0 }
 0x41b   :  { %v601_v48 = vmul.f32 0.25, %v572_v47 }
 0x41d   :  { %v603_v49 = vsel %vm2120_vm6, %v601_v48, -1e+30 }
 0x41e   :  { %v605_v50 = vsel %vm379_vm7, %v603_v49, -inf }
 0x41f   :  { %606 = vmax.xlane.f32.xlu0 %v605_v50  ;;  %v851_v50 = vld [vmem:[%s2219_s5 + $0x38] sm:$0xff] }
 0x420   :  { %871 = vmatpush.msra.mxu2 %v851_v50  ;;  %v983_v50 = vld [vmem:[%s2278_s29 + $0x10] sm:$0xff] }
 0x422   :  { %v598_v51 = vpop.f32.mrf.mxu0 }
 0x423   :  { %v602_v52 = vmul.f32 0.25, %v598_v51  ;;  %v850_v51 = vld [vmem:[%s2219_s5 + $0x30] sm:$0xff] }
 0x424   :  { %872 = vmatpush.msra.mxu2 %v850_v51  ;;  %v1014_v51 = vld [vmem:[%s2283_s3 + $0x10] sm:$0xff] }
 0x425   :  { %v604_v53 = vsel %vm2120_vm6, %v602_v52, -1e+30 }
 0x426   :  { %v608_v54 = vsel %vm379_vm7, %v604_v53, -inf }
 0x427   :  { %609 = vmax.xlane.f32.xlu1 %v608_v54 }
 0x42a   :  { %v728_v13 = vpop.f32.mrf.mxu0 }
 0x432   :  { %v731_v19 = vpop.f32.mrf.mxu0 }
 0x492   :  { %v607_v55 = vpop.xlane.xlu0 %606 }
 0x493   :  { %v611_v56 = vsub.f32 %v603_v49, %v607_v55 }
 0x495   :  { %v613_v58 = vmul.f32 1.442695, %v611_v56 }
 0x497   :  { %1936 = vpow2.f32 %v613_v58  ;;  %v848_v58 = vld [vmem:[%s2219_s5 + $0x20] sm:$0xff] }
 0x49a   :  { %v610_v59 = vpop.xlane.xlu1 %609 }
 0x49b   :  { %v612_v60 = vsub.f32 %v604_v53, %v610_v59  ;;  %v849_v53 = vld [vmem:[%s2219_s5 + $0x28] sm:$0xff] }
 0x49c   :  { %873 = vmatpush.msra.mxu2 %v849_v53  ;;  %v982_v53 = vld [vmem:[%s2278_s29 + $0x8] sm:$0xff] }
 0x49d   :  { %v1937_v61 = vpop.eup %1936  ;;  %v615_v62 = vmul.f32 1.442695, %v612_v60 }
 0x49e   :  { %v617_v63 = vsel %vm379_vm7, %v1937_v61, 0.0  ;;  %874 = vmatpush.msra.mxu2 %v848_v58  ;;  %v1012_v58 = vld [vmem:[%s2283_s3] sm:$0xff] }
 0x49f   :  { %1938 = vpow2.f32 %v615_v62  ;;  %618 = vadd.xlane.f32.xlu2 %v617_v63 }
 0x4a5   :  { %v1939_v0 = vpop.eup %1938 }
 0x4a6   :  { %v620_v1 = vsel %vm379_vm7, %v1939_v0, 0.0 }
 0x4a7   :  { %621 = vadd.xlane.f32.xlu1 %v620_v1 }
 0x512   :  { %v619_v3 = vpop.xlane.xlu2 %618 }
 0x513   :  { %1940 = vrcp.f32 %v619_v3  ;;  %v1909_v3 = vld [vmem:[%s2200_s23] ss:$0 sm:$0xff]  ;;  %s2408_s23 = sld [smem:[%s2493_s0 + %s2015_s20]]  }
 0x519   :  { %v1941_v4 = vpop.eup %1940 }
 0x51a   :  { %v625_v5 = vmul.f32 %v1941_v4, %v1937_v61  ;;  %v622_v6 = vpop.xlane.xlu1 %621  ;;  %v847_v61 = vld [vmem:[%s2219_s5 + $0x18] sm:$0xff] }
 0x51b   :  { %1942 = vrcp.f32 %v622_v6  ;;  %875 = vmatpush.msra.mxu2 %v847_v61 }
 0x51c   :  { %1797 = vmatmul.msk.f32.vlgmr.msra.gmra.mxu1 %vm379_vm7, %v625_v5  ;;  %1944 = vrcp.f32 %v1999_v25 }
 0x521   :  { %v1943_v7 = vpop.eup %1942 }
 0x522   :  { %v626_v8 = vmul.f32 %v1943_v7, %v1939_v0  ;;  %v1908_v0 = vld [vmem:[%s2188_s19] ss:$0 sm:$0xff]  ;;  %s1743_s19 = sld [smem:[%s2493_s0 + %s2014_s16]]  }
 0x524   :  { %1798 = vmatmul.msk.f32.vlgmr.msrb.gmra.mxu2 %vm379_vm7, %v626_v8 }
 0x599   :  { %v647_v10 = vpop.f32.mrf.mxu1 }
 0x59a   :  { %1801 = vmatmul.msk.f32.vlgmr.msrb.gmra.mxu3 %vm320_vm5, %v647_v10 }
 0x5a7   :  { %v670_v11 = vpop.f32.mrf.mxu2 }
 0x5a8   :  { %1802 = vmatmul.msk.f32.gmra.mxu3 %vm320_vm5, %v670_v11 }
 0x61d   :  { %v699_v14 = vpop.f32.mrf.mxu3 }
 0x61e   :  { %v729_v15 = vadd.f32 %v728_v13, %v699_v14 }
 0x620   :  { %v738_v16 = vadd.f32 %v1907_v12, %v729_v15 }
 0x622   :  { %v740_v17 = vadd.f32 %v738_v16, %v2082_v32  ;;  %v1945_v32 = vpop.eup %1944  ;;  %v846_v16 = vld [vmem:[%s2219_s5 + $0x10] sm:$0xff] }
 0x623   :  { %v751_v26 = vmul.f32 32.0, %v1945_v32  ;;  %vm755_vm8 = vweird.f32 %v1945_v32  ;;  %876 = vmatpush.msra.mxu2 %v846_v16 }
 0x624   :  { %v744_v18 = vsel %vm228_vm4, %v740_v17, 0.0 }
 0x625   :  { %745 = vadd.xlane.f32.xlu2 %v744_v18  ;;  %v752_v27 = vsub.f32 1.0, %v751_v26  ;;  %v844_v18 = vld [vmem:[%s2219_s5] sm:$0xff] }
 0x627   :  { %v753_v28 = vmul.f32 %v1945_v32, %v752_v27 }
 0x629   :  { %v754_v29 = vadd.f32 %v1945_v32, %v753_v28 }
 0x62b   :  { %v702_v20 = vpop.f32.mrf.mxu3  ;;  %v2192_v30 = vsel %vm755_vm8, %v1945_v32, %v754_v29  ;;  %v1911_v32 = vld [vmem:[%s1733_s9] ss:$0 sm:$0xff]  ;;  %s2436_s9 = sld [smem:[%s2493_s0 + %s2019_s6]]  }
 0x62c   :  { %v732_v21 = vadd.f32 %v731_v19, %v702_v20  ;;  %v1910_v19 = vld [vmem:[%s2210_s27] ss:$0 sm:$0xff]  ;;  %s2423_s27 = sld [smem:[%s2493_s0 + %s2016_s24]]  }
 0x62e   :  { %v739_v22 = vadd.f32 %v1907_v12, %v732_v21 }
 0x630   :  { %v741_v23 = vadd.f32 %v739_v22, %v2095_v36 }
 0x632   :  { %v747_v24 = vsel %vm228_vm4, %v741_v23, 0.0 }
 0x633   :  { %748 = vadd.xlane.f32.xlu1 %v747_v24 }
 0x698   :  { %v746_v31 = vpop.xlane.xlu2 %745 }
 0x699   :  { %v757_v33 = vmul.f32 %v2192_v30, %v746_v31 }
 0x69b   :  { %v759_v34 = vsub.f32 %v740_v17, %v757_v33  ;;  %v845_v17 = vld [vmem:[%s2219_s5 + $0x8] sm:$0xff]  ;;  %s1746_s5 = sld [smem:[%s2493_s0 + %s2018_s2]]  }
 0x69c   :  { %877 = vmatpush.msra.mxu2 %v845_v17 }
 0x69d   :  { %v761_v35 = vmul.f32 %v759_v34, %v759_v34 }
 0x69e   :  { %878 = vmatpush.msra.mxu2 %v844_v18 }
 0x69f   :  { %v763_v36 = vsel %vm228_vm4, %v761_v35, 0.0 }
 0x6a0   :  { %764 = vadd.xlane.f32.xlu2 %v763_v36 }
 0x6a6   :  { %v749_v37 = vpop.xlane.xlu1 %748 }
 0x6a7   :  { %v758_v38 = vmul.f32 %v2192_v30, %v749_v37 }
 0x6a9   :  { %v2202_v39 = vsub.f32 %v741_v23, %v758_v38 }
 0x6ab   :  { %v762_v40 = vmul.f32 %v2202_v39, %v2202_v39 }
 0x6ad   :  { %v766_v41 = vsel %vm228_vm4, %v762_v40, 0.0 }
 0x6ae   :  { %767 = vadd.xlane.f32.xlu1 %v766_v41 }
 0x713   :  { %v765_v46 = vpop.xlane.xlu2 %764 }
 0x714   :  { %v769_v47 = vmul.f32 %v765_v46, %v2192_v30  ;;  %v947_v46 = vld [vmem:[%s2273_s25 + $0x18] sm:$0xff] }
 0x715   :  { %970 = vmatpush.msra.mxu3 %v947_v46  ;;  %v1828_v46 = vld [vmem:[%s2278_s29 + $0x20] sm:$0xff] }
 0x716   :  { %v771_v48 = vadd.f32 1e-05, %v769_v47  ;;  %v984_v47 = vld [vmem:[%s2278_s29 + $0x18] sm:$0xff] }
 0x717   :  { %1001 = vmatpush.msra.mxu0 %v984_v47 }
 0x718   :  { %1946 = vrsqrt.f32 %v771_v48  ;;  %vm779_vm10 = vweird.f32 %v771_v48 }
 0x719   :  { %1002 = vmatpush.msra.mxu0 %v983_v50 }
 0x71b   :  { %1003 = vmatpush.msra.mxu0 %v982_v53 }
 0x71e   :  { %v1947_v49 = vpop.eup %1946 }
 0x71f   :  { %v774_v52 = vmul.f32 %v1947_v49, %v771_v48  ;;  %vm780_vm9 = vweird.f32 %v1947_v49  ;;  %v1015_v48 = vld [vmem:[%s2283_s3 + $0x18] sm:$0xff] }
 0x720   :  { %vm781_vm11 = vmor %vm779_vm10, %vm780_vm9  ;;  %1032 = vmatpush.msra.mxu1 %v1015_v48 }
 0x721   :  { %v775_v54 = vmul.f32 %v1947_v49, %v774_v52  ;;  %v768_v55 = vpop.xlane.xlu1 %767  ;;  %v945_v52 = vld [vmem:[%s2273_s25 + $0x8] sm:$0xff] }
 0x722   :  { %v770_v56 = vmul.f32 %v768_v55, %v2192_v30  ;;  %1033 = vmatpush.msra.mxu1 %v1014_v51  ;;  %v944_v55 = vld [vmem:[%s2273_s25] sm:$0xff] }
 0x723   :  { %v776_v59 = vmul.f32 0.5, %v775_v54  ;;  %v1013_v54 = vld [vmem:[%s2283_s3 + $0x8] sm:$0xff] }
 0x724   :  { %v772_v60 = vadd.f32 1e-05, %v770_v56  ;;  %1034 = vmatpush.msra.mxu1 %v1013_v54  ;;  %v981_v56 = vld [vmem:[%s2278_s29] sm:$0xff] }
 0x725   :  { %v777_v62 = vsub.f32 1.5, %v776_v59  ;;  %1004 = vmatpush.msra.mxu0 %v981_v56 }
 0x726   :  { %1948 = vrsqrt.f32 %v772_v60  ;;  %vm789_vm13 = vweird.f32 %v772_v60  ;;  %1035 = vmatpush.msra.mxu1 %v1012_v58 }
 0x727   :  { %v778_v63 = vmul.f32 %v1947_v49, %v777_v62 }
 0x729   :  { %v782_v1 = vsel %vm781_vm11, %v1947_v49, %v778_v63  ;;  %v946_v49 = vld [vmem:[%s2273_s25 + $0x10] sm:$0xff] }
 0x72a   :  { %v793_v2 = vmul.f32 %v782_v1, %v759_v34  ;;  %971 = vmatpush.msra.mxu3 %v946_v49 }
 0x72c   :  { %v1949_v4 = vpop.eup %1948  ;;  %v798_v5 = vmul.f32 %v1908_v0, %v793_v2  ;;  %972 = vmatpush.msra.mxu3 %v945_v52 }
 0x72d   :  { %v784_v6 = vmul.f32 %v1949_v4, %v772_v60  ;;  %vm790_vm12 = vweird.f32 %v1949_v4 }
 0x72e   :  { %v803_v7 = vadd.f32 %v1909_v3, %v798_v5  ;;  %vm791_vm14 = vmor %vm789_vm13, %vm790_vm12  ;;  %973 = vmatpush.msra.mxu3 %v944_v55  ;;  %v1918_v55 = vld [vmem:[%s2268_s21 + $0x1] ss:$0 sm:$0xff] }
 0x72f   :  { %v785_v8 = vmul.f32 %v1949_v4, %v784_v6 }
 0x730   :  { %1805 = vmatmul.msk.f32.vlgmr.msrb.gmra.mxu1 %vm228_vm4, %v803_v7 }
 0x731   :  { %v786_v9 = vmul.f32 0.5, %v785_v8 }
 0x733   :  { %v787_v10 = vsub.f32 1.5, %v786_v9  ;;  %v1913_v9 = vld [vmem:[%s2250_s17] ss:$0 sm:$0xff]  ;;  %s2463_s17 = sld [smem:[%s2493_s0 + %s2021_s14]]  }
 0x735   :  { %v788_v11 = vmul.f32 %v1949_v4, %v787_v10 }
 0x737   :  { %v792_v12 = vsel %vm791_vm14, %v1949_v4, %v788_v11 }
 0x738   :  { %v794_v13 = vmul.f32 %v792_v12, %v2202_v39 }
 0x73a   :  { %v799_v14 = vmul.f32 %v1908_v0, %v794_v13 }
 0x73c   :  { %v804_v15 = vadd.f32 %v1909_v3, %v799_v14 }
 0x73e   :  { %1806 = vmatmul.msk.f32.gmra.mxu1 %vm228_vm4, %v804_v15 }
 0x7ad   :  { %v836_v20 = vpop.f32.mrf.mxu1 }
 0x7ae   :  { %v837_v21 = vadd.f32 %v1910_v19, %v836_v20 }
 0x7b0   :  { %v842_v22 = vmax.f32 %v837_v21, 0.0 }
 0x7b2   :  { %1807 = vmatmul.msk.f32.vlgmr.msra.gmra.mxu2 %vm856_vm15, %v842_v22 }
 0x7bb   :  { %v839_v23 = vpop.f32.mrf.mxu1 }
 0x7bc   :  { %v840_v24 = vadd.f32 %v1910_v19, %v839_v23  ;;  %v1914_v23 = vld [vmem:[%s2268_s21] ss:$0 sm:$0xff]  ;;  %s2473_s21 = sld [smem:[%s2493_s0 + %s2022_s18]]  }
 0x7be   :  { %v843_v25 = vmax.f32 %v840_v24, 0.0  ;;  %v1915_v24 = vld [vmem:[%s2302_s7] ss:$0 sm:$0xff] }
 0x7c0   :  { %1808 = vmatmul.msk.f32.gmra.mxu2 %vm856_vm15, %v843_v25 }
 0x835   :  { %v880_v26 = vpop.f32.mrf.mxu2 }
 0x836   :  { %v881_v27 = vadd.f32 %v1911_v32, %v880_v26 }
 0x838   :  { %v886_v28 = vadd.f32 %v881_v27, %v803_v7  ;;  %v1912_v7 = vld [vmem:[%s2245_s13] ss:$0 sm:$0xff]  ;;  %v1824_v27 = vld [vmem:[%s2273_s25 + $0x38] sm:$0xff]  ;;  %s1749_s13 = sld [smem:[%s2493_s0 + %s2020_s10]]  }
 0x83a   :  { %v890_v29 = vsel %vm228_vm4, %v886_v28, 0.0 }
 0x83b   :  { %891 = vadd.xlane.f32.xlu2 %v890_v29  ;;  %v1916_v29 = vld [vmem:[%s2310_s11] ss:$0 sm:$0xff] }
 0x843   :  { %v883_v31 = vpop.f32.mrf.mxu2 }
 0x844   :  { %v884_v33 = vadd.f32 %v1911_v32, %v883_v31  ;;  %v1823_v31 = vld [vmem:[%s2273_s25 + $0x30] sm:$0xff] }
 0x846   :  { %v887_v34 = vadd.f32 %v884_v33, %v804_v15  ;;  %v1822_v33 = vld [vmem:[%s2273_s25 + $0x28] sm:$0xff] }
 0x848   :  { %v893_v35 = vsel %vm228_vm4, %v887_v34, 0.0 }
 0x849   :  { %894 = vadd.xlane.f32.xlu1 %v893_v35 }
 0x8ae   :  { %v892_v36 = vpop.xlane.xlu2 %891 }
 0x8af   :  { %v896_v37 = vmul.f32 %v892_v36, %v2192_v30  ;;  %v1821_v36 = vld [vmem:[%s2273_s25 + $0x20] sm:$0xff]  ;;  %s2478_s25 = sld [smem:[%s2493_s0 + %s2023_s22]]  }
 0x8b1   :  { %v2254_v38 = vsub.f32 %v886_v28, %v896_v37 }
 0x8b3   :  { %v900_v39 = vmul.f32 %v2254_v38, %v2254_v38 }
 0x8b5   :  { %v902_v40 = vsel %vm228_vm4, %v900_v39, 0.0 }
 0x8b6   :  { %903 = vadd.xlane.f32.xlu2 %v902_v40  ;;  %v1831_v40 = vld [vmem:[%s2278_s29 + $0x38] sm:$0xff] }
 0x8bc   :  { %v895_v41 = vpop.xlane.xlu1 %894 }
 0x8bd   :  { %v897_v42 = vmul.f32 %v895_v41, %v2192_v30 }
 0x8bf   :  { %v2260_v43 = vsub.f32 %v887_v34, %v897_v42  ;;  %v1830_v42 = vld [vmem:[%s2278_s29 + $0x30] sm:$0xff] }
 0x8c1   :  { %v901_v44 = vmul.f32 %v2260_v43, %v2260_v43 }
 0x8c3   :  { %v905_v45 = vsel %vm228_vm4, %v901_v44, 0.0 }
 0x8c4   :  { %906 = vadd.xlane.f32.xlu1 %v905_v45 }
 0x929   :  { %v904_v59 = vpop.xlane.xlu2 %903 }
 0x92a   :  { %v908_v60 = vmul.f32 %v904_v59, %v2192_v30 }
 0x92c   :  { %v910_v61 = vadd.f32 1e-05, %v908_v60 }
 0x92e   :  { %1950 = vrsqrt.f32 %v910_v61  ;;  %vm918_vm1 = vweird.f32 %v910_v61 }
 0x934   :  { %v1951_v62 = vpop.eup %1950 }
 0x935   :  { %v913_v63 = vmul.f32 %v1951_v62, %v910_v61  ;;  %vm919_vm0 = vweird.f32 %v1951_v62 }
 0x936   :  { %vm920_vm2 = vmor %vm918_vm1, %vm919_vm0 }
 0x937   :  { %v914_v0 = vmul.f32 %v1951_v62, %v913_v63  ;;  %v907_v1 = vpop.xlane.xlu1 %906 }
 0x938   :  { %v909_v2 = vmul.f32 %v907_v1, %v2192_v30 }
 0x939   :  { %v915_v3 = vmul.f32 0.5, %v914_v0 }
 0x93a   :  { %v911_v4 = vadd.f32 1e-05, %v909_v2 }
 0x93b   :  { %v916_v5 = vsub.f32 1.5, %v915_v3 }
 0x93c   :  { %1952 = vrsqrt.f32 %v911_v4  ;;  %vm928_vm8 = vweird.f32 %v911_v4 }
 0x93d   :  { %v917_v6 = vmul.f32 %v1951_v62, %v916_v5  ;;  %v1838_v5 = vld [vmem:[%s2283_s3 + $0x38] sm:$0xff] }
 0x93f   :  { %v921_v8 = vsel %vm920_vm2, %v1951_v62, %v917_v6  ;;  %v1837_v6 = vld [vmem:[%s2283_s3 + $0x30] sm:$0xff] }
 0x940   :  { %v932_v10 = vmul.f32 %v921_v8, %v2254_v38  ;;  %v1835_v8 = vld [vmem:[%s2283_s3 + $0x20] sm:$0xff] }
 0x942   :  { %v1953_v11 = vpop.eup %1952  ;;  %v937_v12 = vmul.f32 %v1912_v7, %v932_v10 }
 0x943   :  { %v923_v13 = vmul.f32 %v1953_v11, %v911_v4  ;;  %vm929_vm3 = vweird.f32 %v1953_v11 }
 0x944   :  { %v2312_v14 = vadd.f32 %v1913_v9, %v937_v12  ;;  %vm930_vm9 = vmor %vm928_vm8, %vm929_vm3 }
 0x945   :  { %v924_v15 = vmul.f32 %v1953_v11, %v923_v13 }
 0x946   :  { %1809 = vmatmul.msk.f32.vlgmr.msra.gmra.mxu3 %vm228_vm4, %v2312_v14  ;;  %1811 = vmatmul.msk.f32.vlgmr.msra.gmra.mxu0 %vm228_vm4, %v2312_v14 }
 0x947   :  { %v925_v16 = vmul.f32 0.5, %v924_v15  ;;  %1813 = vmatmul.msk.f32.vlgmr.msra.gmra.mxu1 %vm228_vm4, %v2312_v14 }
 0x949   :  { %v926_v17 = vsub.f32 1.5, %v925_v16 }
 0x94b   :  { %v927_v18 = vmul.f32 %v1953_v11, %v926_v17 }
 0x94d   :  { %v931_v19 = vsel %vm930_vm9, %v1953_v11, %v927_v18 }
 0x94e   :  { %v933_v20 = vmul.f32 %v931_v19, %v2260_v43  ;;  %v1829_v43 = vld [vmem:[%s2278_s29 + $0x28] sm:$0xff]  ;;  %v1917_v19 = vld [vmem:[%s2310_s11 + $0x1] ss:$0 sm:$0xff]  ;;  %s1752_s29 = sld [smem:[%s2493_s0 + %s2024_s26]]  }
 0x950   :  { %v938_v21 = vmul.f32 %v1912_v7, %v933_v20  ;;  %v1836_v7 = vld [vmem:[%s2283_s3 + $0x28] sm:$0xff]  ;;  %s1754_s3 = sld [smem:[%s2493_s0 + %s2025_s30]]  }
 0x952   :  { %v2321_v22 = vadd.f32 %v1913_v9, %v938_v21  ;;  %v1168_v21 = vld [vmem:[%s2372_s15 + $0x8] sm:$0xff] }
 0x954   :  { %1810 = vmatmul.msk.f32.gmra.mxu3 %vm228_vm4, %v2321_v22  ;;  %1812 = vmatmul.msk.f32.gmra.mxu0 %vm228_vm4, %v2321_v22 }
 0x955   :  { %1814 = vmatmul.msk.f32.gmra.mxu1 %vm228_vm4, %v2321_v22 }
 0x9c3   :  { %v1006_v25 = vpop.f32.mrf.mxu0 }
 0x9c4   :  { %v1007_v32 = vadd.f32 %v1914_v23, %v1006_v25  ;;  %v1037_v26 = vpop.f32.mrf.mxu1  ;;  %v1167_v25 = vld [vmem:[%s2372_s15] sm:$0xff] }
 0x9c5   :  { %v1038_v28 = vadd.f32 %v1915_v24, %v1037_v26  ;;  %v1919_v26 = vld [vmem:[%s2302_s7 + $0x1] ss:$0 sm:$0xff] }
 0x9c6   :  { %1815 = vmatpush.xpose.msk.msrb.mxu2 %vm320_vm5, %v1007_v32 }
 0x9c7   :  { %1139 = vmatpush.msrb.mxu0 %v1038_v28 }
 0x9c9   :  { %v975_v34 = vpop.f32.mrf.mxu3  ;;  %1257 = vmatpush.msra.mxu0 %v1838_v5 }
 0x9ca   :  { %1191 = vmatpush.msra.mxu2 %v1824_v27  ;;  %v976_v35 = vadd.f32 %v1916_v29, %v975_v34 }
 0x9cb   :  { %1258 = vmatpush.msra.mxu0 %v1837_v6 }
 0x9cc   :  { %1192 = vmatpush.msra.mxu2 %v1823_v31 }
 0x9cd   :  { %1816 = vmatmul.msk.f32.vlgmr.msrb.gmra.mxu2 %vm320_vm5, %v976_v35  ;;  %1259 = vmatpush.msra.mxu0 %v1836_v7 }
 0x9ce   :  { %1193 = vmatpush.msra.mxu2 %v1822_v33 }
 0x9cf   :  { %1260 = vmatpush.msra.mxu0 %v1835_v8 }
 0x9d0   :  { %1194 = vmatpush.msra.mxu2 %v1821_v36 }
 0x9d1   :  { %v1009_v37 = vpop.f32.mrf.mxu0 }
 0x9d2   :  { %v1010_v38 = vadd.f32 %v1914_v23, %v1009_v37  ;;  %v1040_v39 = vpop.f32.mrf.mxu1 }
 0x9d3   :  { %v1041_v41 = vadd.f32 %v1915_v24, %v1040_v39 }
 0x9d4   :  { %1817 = vmatpush.xpose.msk.msrb.mxu3 %vm320_vm5, %v1010_v38 }
 0x9d5   :  { %1826 = vmatmul.msk.f32.vlgmr.msra.gmra.mxu2 %vm228_vm4, %v2312_v14  ;;  %1162 = vmatpush.msrb.mxu1 %v1041_v41 }
 0x9d7   :  { %v978_v44 = vpop.f32.mrf.mxu3 }
 0x9d8   :  { %1224 = vmatpush.msra.mxu3 %v1831_v40  ;;  %v979_v45 = vadd.f32 %v1916_v29, %v978_v44 }
 0x9da   :  { %1225 = vmatpush.msra.mxu3 %v1830_v42 }
 0x9db   :  { %1818 = vmatmul.msk.f32.vlgmr.msrb.gmra.mxu3 %vm320_vm5, %v979_v45 }
 0x9dc   :  { %1226 = vmatpush.msra.mxu3 %v1829_v43 }
 0x9dd   :  { %1827 = vmatmul.msk.f32.gmra.mxu2 %vm228_vm4, %v2321_v22 }
 0x9de   :  { %1227 = vmatpush.msra.mxu3 %v1828_v46 }
 0x9e3   :  { %1833 = vmatmul.msk.f32.vlgmr.msra.gmra.mxu3 %vm228_vm4, %v2312_v14 }
 0x9eb   :  { %1834 = vmatmul.msk.f32.gmra.mxu3 %vm228_vm4, %v2321_v22 }
 0xa50   :  { %v1066_v47 = vpop.f32.mrf.mxu2 }
 0xa51   :  { %v1095_v48 = vmul.f32 0.25, %v1066_v47 }
 0xa53   :  { %v1097_v49 = vsel %vm2120_vm6, %v1095_v48, -1e+30 }
 0xa54   :  { %v1099_v50 = vsel %vm379_vm7, %v1097_v49, -inf }
 0xa55   :  { %1100 = vmax.xlane.f32.xlu1 %v1099_v50 }
 0xa58   :  { %v1196_v18 = vpop.f32.mrf.mxu2 }
 0xa59   :  { %v1197_v20 = vadd.f32 %v1917_v19, %v1196_v18 }
 0xa5e   :  { %v1092_v51 = vpop.f32.mrf.mxu3 }
 0xa5f   :  { %v1096_v52 = vmul.f32 0.25, %v1092_v51  ;;  %v1849_v51 = vld [vmem:[%s2372_s15 + $0x18] sm:$0xff] }
 0xa60   :  { %v1199_v23 = vpop.f32.mrf.mxu2 }
 0xa61   :  { %v1098_v53 = vsel %vm2120_vm6, %v1096_v52, -1e+30  ;;  %v1200_v24 = vadd.f32 %v1917_v19, %v1199_v23  ;;  %v1518_v23 = vld [vmem:[%s1746_s5 + $0x8] sm:$0xff] }
 0xa62   :  { %v1102_v54 = vsel %vm379_vm7, %v1098_v53, -inf }
 0xa63   :  { %1103 = vmax.xlane.f32.xlu2 %v1102_v54 }
 0xa66   :  { %v1229_v56 = vpop.f32.mrf.mxu3 }
 0xa67   :  { %v1230_v58 = vadd.f32 %v1918_v55, %v1229_v56 }
 0xa69   :  { %1842 = vmatpush.xpose.msk.msra.mxu1 %vm320_vm5, %v1230_v58 }
 0xa6e   :  { %v1232_v13 = vpop.f32.mrf.mxu3 }
 0xa6f   :  { %v1233_v17 = vadd.f32 %v1918_v55, %v1232_v13 }
 0xac8   :  { %v1101_v59 = vpop.xlane.xlu1 %1100 }
 0xac9   :  { %v1105_v60 = vsub.f32 %v1097_v49, %v1101_v59  ;;  %v1848_v59 = vld [vmem:[%s2372_s15 + $0x10] sm:$0xff] }
 0xacb   :  { %v1107_v61 = vmul.f32 1.442695, %v1105_v60 }
 0xacd   :  { %1954 = vpow2.f32 %v1107_v61 }
 0xad3   :  { %v1955_v62 = vpop.eup %1954 }
 0xad4   :  { %v1111_v63 = vsel %vm379_vm7, %v1955_v62, 0.0 }
 0xad5   :  { %1112 = vadd.xlane.f32.xlu2 %v1111_v63 }
 0xad6   :  { %v1104_v0 = vpop.xlane.xlu2 %1103 }
 0xad7   :  { %v1106_v1 = vsub.f32 %v1098_v53, %v1104_v0 }
 0xad9   :  { %v1109_v2 = vmul.f32 1.442695, %v1106_v1 }
 0xadb   :  { %1956 = vpow2.f32 %v1109_v2 }
 0xae1   :  { %v1957_v3 = vpop.eup %1956 }
 0xae2   :  { %v1114_v4 = vsel %vm379_vm7, %v1957_v3, 0.0 }
 0xae3   :  { %1115 = vadd.xlane.f32.xlu0 %v1114_v4 }
 0xb48   :  { %v1113_v9 = vpop.xlane.xlu2 %1112 }
 0xb49   :  { %1958 = vrcp.f32 %v1113_v9 }
 0xb4f   :  { %v1959_v10 = vpop.eup %1958 }
 0xb50   :  { %v1119_v11 = vmul.f32 %v1959_v10, %v1955_v62  ;;  %v1920_v62 = vld [vmem:[%s1743_s19] ss:$0 sm:$0xff] }
 0xb52   :  { %1819 = vmatmul.msk.f32.vlgmr.msrb.gmra.mxu0 %vm379_vm7, %v1119_v11 }
 0xb53   :  { %1415 = vmatpush.msrb.mxu0 %v1849_v51 }
 0xb55   :  { %1416 = vmatpush.msrb.mxu0 %v1848_v59  ;;  %v1558_v59 = vld [vmem:[%s2436_s9 + $0x10] sm:$0xff] }
 0xb56   :  { %v1116_v12 = vpop.xlane.xlu0 %1115 }
 0xb57   :  { %1960 = vrcp.f32 %v1116_v12 }
 0xb5a   :  { %1840 = vmatmul.msk.f32.vlgmr.msra.gmra.mxu0 %vm228_vm4, %v2312_v14 }
 0xb5d   :  { %v1961_v15 = vpop.eup %1960 }
 0xb5e   :  { %v1120_v16 = vmul.f32 %v1961_v15, %v1957_v3 }
 0xb60   :  { %1820 = vmatmul.msk.f32.vlgmr.msrb.gmra.mxu1 %vm379_vm7, %v1120_v16 }
 0xb61   :  { %1844 = vmatpush.xpose.msk.msrb.mxu1 %vm320_vm5, %v1233_v17 }
 0xb62   :  { %1841 = vmatmul.msk.f32.gmra.mxu0 %vm228_vm4, %v2321_v22 }
 0xb68   :  { %1843 = vmatmul.msk.f32.vlgmr.msra.gmra.mxu1 %vm320_vm5, %v1197_v20  ;;  %v1520_v20 = vld [vmem:[%s1746_s5 + $0x18] sm:$0xff] }
 0xb69   :  { %1444 = vmatpush.msra.mxu1 %v1168_v21  ;;  %v1519_v21 = vld [vmem:[%s1746_s5 + $0x10] sm:$0xff] }
 0xb6b   :  { %1445 = vmatpush.msra.mxu1 %v1167_v25 }
 0xb70   :  { %1845 = vmatmul.msk.f32.vlgmr.msrb.gmra.mxu1 %vm320_vm5, %v1200_v24  ;;  %v1517_v24 = vld [vmem:[%s1746_s5] sm:$0xff] }
 0xbcf   :  { %v1141_v32 = vpop.f32.mrf.mxu0 }
 0xbd0   :  { %1852 = vmatmul.msk.f32.vlgmr.msra.gmra.mxu1 %vm320_vm5, %v1141_v32 }
 0xbd7   :  { %v1262_v27 = vpop.f32.mrf.mxu0 }
 0xbd8   :  { %v1263_v28 = vadd.f32 %v1919_v26, %v1262_v27  ;;  %v1563_v27 = vld [vmem:[%s2436_s9 + $0x38] sm:$0xff] }
 0xbda   :  { %1364 = vmatpush.msrb.mxu2 %v1263_v28  ;;  %v1562_v28 = vld [vmem:[%s2436_s9 + $0x30] sm:$0xff] }
 0xbdc   :  { %1543 = vmatpush.msra.mxu2 %v1520_v20 }
 0xbdd   :  { %v1164_v29 = vpop.f32.mrf.mxu1 }
 0xbde   :  { %1853 = vmatmul.msk.f32.gmra.mxu1 %vm320_vm5, %v1164_v29  ;;  %1544 = vmatpush.msra.mxu2 %v1519_v21  ;;  %v1561_v29 = vld [vmem:[%s2436_s9 + $0x28] sm:$0xff] }
 0xbdf   :  { %v1265_v31 = vpop.f32.mrf.mxu0 }
 0xbe0   :  { %v1266_v33 = vadd.f32 %v1919_v26, %v1265_v31  ;;  %1545 = vmatpush.msra.mxu2 %v1518_v23 }
 0xbe2   :  { %1387 = vmatpush.msrb.mxu3 %v1266_v33  ;;  %1546 = vmatpush.msra.mxu2 %v1517_v24  ;;  %v1658_v24 = vld [vmem:[%s1752_s29 + $0x18] sm:$0xff] }
 0xbe3   :  { %1681 = vmatpush.msra.mxu0 %v1658_v24 }
 0xbe4   :  { %1582 = vmatpush.msra.mxu3 %v1563_v27 }
 0xbe5   :  { %v1291_v34 = vpop.f32.mrf.mxu1 }
 0xbe6   :  { %v1320_v35 = vmul.f32 0.25, %v1291_v34  ;;  %1583 = vmatpush.msra.mxu3 %v1562_v28  ;;  %v1560_v34 = vld [vmem:[%s2436_s9 + $0x20] sm:$0xff] }
 0xbe8   :  { %v1322_v36 = vsel %vm2120_vm6, %v1320_v35, -1e+30  ;;  %1584 = vmatpush.msra.mxu3 %v1561_v29 }
 0xbe9   :  { %v1324_v37 = vsel %vm379_vm7, %v1322_v36, -inf }
 0xbea   :  { %1325 = vmax.xlane.f32.xlu0 %v1324_v37  ;;  %v1559_v37 = vld [vmem:[%s2436_s9 + $0x18] sm:$0xff]  ;;  %1585 = vmatpush.msra.mxu3 %v1560_v34 }
 0xbec   :  { %1586 = vmatpush.msra.mxu3 %v1559_v37 }
 0xbed   :  { %v1317_v38 = vpop.f32.mrf.mxu1 }
 0xbee   :  { %v1321_v39 = vmul.f32 0.25, %v1317_v38  ;;  %1587 = vmatpush.msra.mxu3 %v1558_v59 }
 0xbf0   :  { %v1323_v40 = vsel %vm2120_vm6, %v1321_v39, -1e+30 }
 0xbf1   :  { %v1327_v41 = vsel %vm379_vm7, %v1323_v40, -inf }
 0xbf2   :  { %1328 = vmax.xlane.f32.xlu1 %v1327_v41 }
 0xc4d   :  { %v1447_v63 = vpop.f32.mrf.mxu1 }
 0xc5b   :  { %v1450_v5 = vpop.f32.mrf.mxu1 }
 0xc5d   :  { %v1326_v42 = vpop.xlane.xlu0 %1325 }
 0xc5e   :  { %v1330_v43 = vsub.f32 %v1322_v36, %v1326_v42 }
 0xc60   :  { %v1332_v44 = vmul.f32 1.442695, %v1330_v43 }
 0xc62   :  { %1962 = vpow2.f32 %v1332_v44 }
 0xc65   :  { %v1329_v45 = vpop.xlane.xlu1 %1328 }
 0xc66   :  { %v1331_v46 = vsub.f32 %v1323_v40, %v1329_v45  ;;  %v1921_v45 = vld [vmem:[%s2408_s23] ss:$0 sm:$0xff] }
 0xc68   :  { %v1963_v47 = vpop.eup %1962  ;;  %v1334_v48 = vmul.f32 1.442695, %v1331_v46 }
 0xc69   :  { %v1336_v49 = vsel %vm379_vm7, %v1963_v47, 0.0 }
 0xc6a   :  { %1964 = vpow2.f32 %v1334_v48  ;;  %1337 = vadd.xlane.f32.xlu2 %v1336_v49  ;;  %v1922_v49 = vld [vmem:[%s2423_s27] ss:$0 sm:$0xff] }
 0xc70   :  { %v1965_v50 = vpop.eup %1964 }
 0xc71   :  { %v1339_v57 = vsel %vm379_vm7, %v1965_v50, 0.0 }
 0xc72   :  { %1340 = vadd.xlane.f32.xlu0 %v1339_v57 }
 0xcdd   :  { %v1338_v52 = vpop.xlane.xlu2 %1337 }
 0xcde   :  { %1966 = vrcp.f32 %v1338_v52 }
 0xce4   :  { %v1967_v53 = vpop.eup %1966 }
 0xce5   :  { %v1344_v54 = vmul.f32 %v1967_v53, %v1963_v47  ;;  %v1341_v55 = vpop.xlane.xlu0 %1340 }
 0xce6   :  { %1968 = vrcp.f32 %v1341_v55 }
 0xce7   :  { %1846 = vmatmul.msk.f32.vlgmr.msrb.gmra.mxu2 %vm379_vm7, %v1344_v54 }
 0xcec   :  { %v1969_v56 = vpop.eup %1968 }
 0xced   :  { %v1345_v58 = vmul.f32 %v1969_v56, %v1965_v50 }
 0xcef   :  { %1847 = vmatmul.msk.f32.vlgmr.msrb.gmra.mxu3 %vm379_vm7, %v1345_v58 }
 0xd6a   :  { %v1366_v60 = vpop.f32.mrf.mxu2 }
 0xd6b   :  { %1850 = vmatmul.msk.f32.vlgmr.msrb.gmra.mxu0 %vm320_vm5, %v1366_v60  ;;  %v1557_v60 = vld [vmem:[%s2436_s9 + $0x8] sm:$0xff] }
 0xd6c   :  { %1588 = vmatpush.msra.mxu3 %v1557_v60 }
 0xd72   :  { %v1389_v61 = vpop.f32.mrf.mxu3 }
 0xd73   :  { %1851 = vmatmul.msk.f32.gmra.mxu0 %vm320_vm5, %v1389_v61  ;;  %v1556_v61 = vld [vmem:[%s2436_s9] sm:$0xff] }
 0xd74   :  { %1589 = vmatpush.msra.mxu3 %v1556_v61 }
 0xde8   :  { %v1418_v0 = vpop.f32.mrf.mxu0 }
 0xde9   :  { %v1448_v1 = vadd.f32 %v1447_v63, %v1418_v0 }
 0xdeb   :  { %v1457_v2 = vadd.f32 %v1920_v62, %v1448_v1 }
 0xded   :  { %v1459_v3 = vadd.f32 %v1457_v2, %v2312_v14 }
 0xdef   :  { %v1463_v4 = vsel %vm228_vm4, %v1459_v3, 0.0 }
 0xdf0   :  { %1464 = vadd.xlane.f32.xlu1 %v1463_v4  ;;  %v1421_v6 = vpop.f32.mrf.mxu0 }
 0xdf1   :  { %v1451_v7 = vadd.f32 %v1450_v5, %v1421_v6  ;;  %v1924_v5 = vld [vmem:[%s1749_s13] ss:$0 sm:$0xff] }
 0xdf3   :  { %v1458_v8 = vadd.f32 %v1920_v62, %v1451_v7  ;;  %v1923_v62 = vld [vmem:[%s2428_s1] ss:$0 sm:$0xff] }
 0xdf5   :  { %v1460_v9 = vadd.f32 %v1458_v8, %v2321_v22 }
 0xdf7   :  { %v1466_v10 = vsel %vm228_vm4, %v1460_v9, 0.0 }
 0xdf8   :  { %1467 = vadd.xlane.f32.xlu2 %v1466_v10 }
 0xe63   :  { %v1465_v11 = vpop.xlane.xlu1 %1464 }
 0xe64   :  { %v1469_v14 = vmul.f32 %v1465_v11, %v2192_v30 }
 0xe66   :  { %v1471_v12 = vsub.f32 %v1459_v3, %v1469_v14 }
 0xe68   :  { %v1473_v13 = vmul.f32 %v1471_v12, %v1471_v12 }
 0xe6a   :  { %v1475_v15 = vsel %vm228_vm4, %v1473_v13, 0.0 }
 0xe6b   :  { %v1468_v16 = vpop.xlane.xlu2 %1467  ;;  %1476 = vadd.xlane.f32.xlu0 %v1475_v15 }
 0xe6c   :  { %v1470_v17 = vmul.f32 %v1468_v16, %v2192_v30 }
 0xe6e   :  { %v2415_v18 = vsub.f32 %v1460_v9, %v1470_v17 }
 0xe70   :  { %v1474_v19 = vmul.f32 %v2415_v18, %v2415_v18 }
 0xe72   :  { %v1478_v22 = vsel %vm228_vm4, %v1474_v19, 0.0 }
 0xe73   :  { %1479 = vadd.xlane.f32.xlu1 %v1478_v22 }
 0xede   :  { %v1477_v25 = vpop.xlane.xlu0 %1476 }
 0xedf   :  { %v1481_v32 = vmul.f32 %v1477_v25, %v2192_v30  ;;  %v1657_v25 = vld [vmem:[%s1752_s29 + $0x10] sm:$0xff] }
 0xee0   :  { %1682 = vmatpush.msra.mxu0 %v1657_v25 }
 0xee1   :  { %v1483_v26 = vadd.f32 1e-05, %v1481_v32  ;;  %v1656_v32 = vld [vmem:[%s1752_s29 + $0x8] sm:$0xff] }
 0xee2   :  { %1683 = vmatpush.msra.mxu0 %v1656_v32 }
 0xee3   :  { %1970 = vrsqrt.f32 %v1483_v26  ;;  %vm1491_vm6 = vweird.f32 %v1483_v26 }
 0xee6   :  { %v1480_v31 = vpop.xlane.xlu1 %1479 }
 0xee7   :  { %v1482_v33 = vmul.f32 %v1480_v31, %v2192_v30 }
 0xee9   :  { %v1971_v35 = vpop.eup %1970  ;;  %v1484_v36 = vadd.f32 1e-05, %v1482_v33 }
 0xeea   :  { %v1486_v38 = vmul.f32 %v1971_v35, %v1483_v26  ;;  %vm1492_vm5 = vweird.f32 %v1971_v35  ;;  %v1655_v26 = vld [vmem:[%s1752_s29] sm:$0xff] }
 0xeeb   :  { %1972 = vrsqrt.f32 %v1484_v36  ;;  %vm1493_vm7 = vmor %vm1491_vm6, %vm1492_vm5  ;;  %vm1501_vm11 = vweird.f32 %v1484_v36  ;;  %1684 = vmatpush.msra.mxu0 %v1655_v26 }
 0xeec   :  { %v1487_v39 = vmul.f32 %v1971_v35, %v1486_v38 }
 0xeee   :  { %v1488_v40 = vmul.f32 0.5, %v1487_v39 }
 0xef0   :  { %v1489_v41 = vsub.f32 1.5, %v1488_v40 }
 0xef1   :  { %v1973_v42 = vpop.eup %1972 }
 0xef2   :  { %v1490_v43 = vmul.f32 %v1971_v35, %v1489_v41  ;;  %v1496_v44 = vmul.f32 %v1973_v42, %v1484_v36  ;;  %vm1502_vm10 = vweird.f32 %v1973_v42 }
 0xef3   :  { %vm1503_vm12 = vmor %vm1501_vm11, %vm1502_vm10 }
 0xef4   :  { %v1494_v46 = vsel %vm1493_vm7, %v1971_v35, %v1490_v43  ;;  %v1497_v47 = vmul.f32 %v1973_v42, %v1496_v44  ;;  %v1925_v43 = vld [vmem:[%s2463_s17] ss:$0 sm:$0xff] }
 0xef5   :  { %v1505_v48 = vmul.f32 %v1494_v46, %v1471_v12 }
 0xef6   :  { %v1498_v50 = vmul.f32 0.5, %v1497_v47 }
 0xef7   :  { %v1510_v57 = vmul.f32 %v1921_v45, %v1505_v48 }
 0xef8   :  { %v1499_v51 = vsub.f32 1.5, %v1498_v50 }
 0xef9   :  { %v1515_v52 = vadd.f32 %v1922_v49, %v1510_v57 }
 0xefa   :  { %v1500_v53 = vmul.f32 %v1973_v42, %v1499_v51 }
 0xefb   :  { %1854 = vmatmul.msk.f32.vlgmr.msra.gmra.mxu2 %vm228_vm4, %v1515_v52 }
 0xefc   :  { %v1504_v54 = vsel %vm1503_vm12, %v1973_v42, %v1500_v53 }
 0xefd   :  { %v1506_v55 = vmul.f32 %v1504_v54, %v2415_v18 }
 0xeff   :  { %v1511_v56 = vmul.f32 %v1921_v45, %v1506_v55  ;;  %v1927_v55 = vld [vmem:[%s2478_s25] ss:$0 sm:$0xff] }
 0xf01   :  { %v1516_v58 = vadd.f32 %v1922_v49, %v1511_v56 }
 0xf03   :  { %1855 = vmatmul.msk.f32.gmra.mxu2 %vm228_vm4, %v1516_v58 }
 0xf7e   :  { %v1548_v63 = vpop.f32.mrf.mxu2 }
 0xf7f   :  { %v1549_v0 = vadd.f32 %v1923_v62, %v1548_v63 }
 0xf81   :  { %v1554_v1 = vmax.f32 %v1549_v0, 0.0 }
 0xf83   :  { %1856 = vmatmul.msk.f32.vlgmr.msra.gmra.mxu3 %vm856_vm15, %v1554_v1 }
 0xf86   :  { %v1551_v2 = vpop.f32.mrf.mxu2 }
 0xf87   :  { %v1552_v3 = vadd.f32 %v1923_v62, %v1551_v2 }
 0xf89   :  { %v1555_v4 = vmax.f32 %v1552_v3, 0.0 }
 0xf8b   :  { %1857 = vmatmul.msk.f32.gmra.mxu3 %vm856_vm15, %v1555_v4 }
0x1006   :  { %v1591_v6 = vpop.f32.mrf.mxu3 }
0x1007   :  { %v1592_v7 = vadd.f32 %v1924_v5, %v1591_v6 }
0x1009   :  { %v1597_v8 = vadd.f32 %v1592_v7, %v1515_v52 }
0x100b   :  { %v1601_v9 = vsel %vm228_vm4, %v1597_v8, 0.0 }
0x100c   :  { %1602 = vadd.xlane.f32.xlu2 %v1601_v9 }
0x100e   :  { %v1594_v10 = vpop.f32.mrf.mxu3 }
0x100f   :  { %v1595_v11 = vadd.f32 %v1924_v5, %v1594_v10 }
0x1011   :  { %v1598_v14 = vadd.f32 %v1595_v11, %v1516_v58 }
0x1013   :  { %v1604_v12 = vsel %vm228_vm4, %v1598_v14, 0.0 }
0x1014   :  { %1605 = vadd.xlane.f32.xlu0 %v1604_v12 }
0x107f   :  { %v1603_v13 = vpop.xlane.xlu2 %1602 }
0x1080   :  { %v1607_v15 = vmul.f32 %v1603_v13, %v2192_v30 }
0x1082   :  { %v1609_v16 = vsub.f32 %v1597_v8, %v1607_v15 }
0x1084   :  { %v1611_v17 = vmul.f32 %v1609_v16, %v1609_v16 }
0x1086   :  { %v1613_v18 = vsel %vm228_vm4, %v1611_v17, 0.0 }
0x1087   :  { %1614 = vadd.xlane.f32.xlu1 %v1613_v18  ;;  %v1606_v19 = vpop.xlane.xlu0 %1605 }
0x1088   :  { %v1608_v22 = vmul.f32 %v1606_v19, %v2192_v30 }
0x108a   :  { %v1610_v20 = vsub.f32 %v1598_v14, %v1608_v22 }
0x108c   :  { %v1612_v21 = vmul.f32 %v1610_v20, %v1610_v20 }
0x108e   :  { %v1616_v23 = vsel %vm228_vm4, %v1612_v21, 0.0 }
0x108f   :  { %1617 = vadd.xlane.f32.xlu2 %v1616_v23 }
0x10fa   :  { %v1615_v27 = vpop.xlane.xlu1 %1614 }
0x10fb   :  { %v1619_v28 = vmul.f32 %v1615_v27, %v2192_v30 }
0x10fd   :  { %v1621_v29 = vadd.f32 1e-05, %v1619_v28 }
0x10ff   :  { %1974 = vrsqrt.f32 %v1621_v29  ;;  %vm1629_vm14 = vweird.f32 %v1621_v29 }
0x1102   :  { %v1618_v31 = vpop.xlane.xlu2 %1617 }
0x1103   :  { %v1620_v33 = vmul.f32 %v1618_v31, %v2192_v30  ;;  %v1926_v30 = vld [vmem:[%s2473_s21] ss:$0 sm:$0xff] }
0x1105   :  { %v1975_v34 = vpop.eup %1974  ;;  %v1622_v35 = vadd.f32 1e-05, %v1620_v33 }
0x1106   :  { %v1624_v36 = vmul.f32 %v1975_v34, %v1621_v29  ;;  %vm1630_vm13 = vweird.f32 %v1975_v34 }
0x1107   :  { %1976 = vrsqrt.f32 %v1622_v35  ;;  %vm1631_vm15 = vmor %vm1629_vm14, %vm1630_vm13  ;;  %vm1639_vm1 = vweird.f32 %v1622_v35 }
0x1108   :  { %v1625_v37 = vmul.f32 %v1975_v34, %v1624_v36 }
0x110a   :  { %v1626_v38 = vmul.f32 0.5, %v1625_v37 }
0x110c   :  { %v1627_v39 = vsub.f32 1.5, %v1626_v38 }
0x110d   :  { %v1977_v40 = vpop.eup %1976 }
0x110e   :  { %v1628_v41 = vmul.f32 %v1975_v34, %v1627_v39  ;;  %v1634_v42 = vmul.f32 %v1977_v40, %v1622_v35  ;;  %vm1640_vm0 = vweird.f32 %v1977_v40 }
0x110f   :  { %vm1641_vm2 = vmor %vm1639_vm1, %vm1640_vm0 }
0x1110   :  { %v1632_v44 = vsel %vm1631_vm15, %v1975_v34, %v1628_v41  ;;  %v1635_v45 = vmul.f32 %v1977_v40, %v1634_v42 }
0x1111   :  { %v1643_v46 = vmul.f32 %v1632_v44, %v1609_v16 }
0x1112   :  { %v1636_v47 = vmul.f32 0.5, %v1635_v45 }
0x1113   :  { %v1648_v48 = vmul.f32 %v1925_v43, %v1643_v46 }
0x1114   :  { %v1637_v49 = vsub.f32 1.5, %v1636_v47 }
0x1115   :  { %v1653_v50 = vadd.f32 %v1926_v30, %v1648_v48 }
0x1116   :  { %v1638_v57 = vmul.f32 %v1977_v40, %v1637_v49 }
0x1117   :  { %1858 = vmatmul.msk.f32.vlgmr.msra.gmra.mxu0 %vm228_vm4, %v1653_v50 }
0x1118   :  { %v1642_v51 = vsel %vm1641_vm2, %v1977_v40, %v1638_v57 }
0x1119   :  { %v1644_v52 = vmul.f32 %v1642_v51, %v1610_v20 }
0x111b   :  { %v1649_v53 = vmul.f32 %v1925_v43, %v1644_v52 }
0x111d   :  { %v1654_v54 = vadd.f32 %v1926_v30, %v1649_v53 }
0x111f   :  { %1859 = vmatmul.msk.f32.gmra.mxu0 %vm228_vm4, %v1654_v54 }
0x1194   :  { %v1686_v56 = vpop.f32.mrf.mxu0 }
0x1195   :  { %v1687_v58 = vadd.f32 %v1927_v55, %v1686_v56 }
0x1197   :  { %1692 = vmax.xlane.f32.xlu0 %v1687_v58 }
0x119c   :  { %v1689_v59 = vpop.f32.mrf.mxu0 }
0x119d   :  { %v1690_v60 = vadd.f32 %v1927_v55, %v1689_v59 }
0x119f   :  { %1694 = vmax.xlane.f32.xlu1 %v1690_v60 }
0x120a   :  { %v1693_v61 = vpop.xlane.xlu0 %1692 }
0x120b   :  { %v1696_v62 = vsub.f32 %v1687_v58, %v1693_v61 }
0x120d   :  { %v1698_v63 = vmul.f32 1.442695, %v1696_v62 }
0x120f   :  { %1978 = vpow2.f32 %v1698_v63 }
0x1212   :  { %v1695_v0 = vpop.xlane.xlu1 %1694 }
0x1213   :  { %v1697_v1 = vsub.f32 %v1690_v60, %v1695_v0 }
0x1215   :  { %v1979_v2 = vpop.eup %1978  ;;  %v1700_v3 = vmul.f32 1.442695, %v1697_v1 }
0x1216   :  { %1702 = vadd.xlane.f32.xlu2 %v1979_v2 }
0x1217   :  { %1980 = vpow2.f32 %v1700_v3 }
0x121d   :  { %v1981_v4 = vpop.eup %1980 }
0x121e   :  { %1704 = vadd.xlane.f32.xlu0 %v1981_v4 }
0x1289   :  { %v1703_v5 = vpop.xlane.xlu2 %1702 }
0x128a   :  { %1982 = vlog2.f32 %v1703_v5 }
0x1290   :  { %v1983_v6 = vpop.eup %1982 }
0x1291   :  { %v1707_v7 = vmul.f32 0.6931472, %v1983_v6  ;;  %v1705_v8 = vpop.xlane.xlu0 %1704 }
0x1292   :  { %1984 = vlog2.f32 %v1705_v8 }
0x1293   :  { %v1710_v9 = vsub.f32 %v1696_v62, %v1707_v7 }
0x1295   :  { %1712 = vst [vmem:[%s1754_s3] sm:$0xff] %v1710_v9 }
0x1298   :  { %v1985_v10 = vpop.eup %1984 }
0x1299   :  { %v1709_v11 = vmul.f32 0.6931472, %v1985_v10 }
0x129b   :  { %v1711_v14 = vsub.f32 %v1697_v1, %v1709_v11 }
0x129d   :  { %1713 = vst [vmem:[%s1754_s3 + $0x8] sm:$0xff] %v1711_v14 }

</bundles_post_ra>
